<compile_context>
chip_gen: v7x
topology: tpu7x:2x2x1
jax: 0.10.0
libtpu: 0.0.40
codegen_flags: <defaults>
</compile_context>

<pallas_src>
import jax
import jax.numpy as jnp
from jax import lax
from jax.experimental import pallas as pl
from jax.experimental.pallas import tpu as pltpu

VOCAB_SIZE = 256      # vocab_size
EMBEDDING_DIM = 128   # embedding_dim
CONTEXT_SIZE = 2      # context_size (classic trigram model)
HIDDEN = 128          # nn.Linear(context_size * embedding_dim, 128)

BATCH = 256           # contexts per call (demo); grid = BATCH // TILE_B = 2
TILE_B = 128          # batch tile per grid step (matches v5e MXU; 256 ok on v6e/v7x)


def _round_up(x, m):
    return (x + m - 1) // m * m


def ngram_kernel(idx_ref, w1e_ref, b1_ref, w2_ref, b2_ref, out_ref):
    tb, ctx = idx_ref.shape            # (TILE_B, CONTEXT_SIZE)
    cv, hidden = w1e_ref.shape         # (CONTEXT_SIZE * VOCAB, HIDDEN)
    vocab = cv // ctx

    idx = idx_ref[...]                                              # (tb, C) int32
    lane_iota = lax.broadcasted_iota(jnp.int32, (tb, cv), 1)        # (tb, C*V)

    # Lane-concatenated one-hot: segment c holds a one-hot of idx[:, c] offset by
    # c*V.  Segments never collide, so OR the per-context masks (no zeros tile).
    mask = lane_iota == (idx[:, 0:1] + 0 * vocab)
    for c in range(1, ctx):
        mask = mask | (lane_iota == (idx[:, c:c + 1] + c * vocab))
    onehot = mask.astype(w1e_ref.dtype)                             # bf16, exact 0/1

    # Fused embedding-gather + linear1: single (tb, C*V) @ (C*V, H) MXU matmul.
    h = jnp.dot(onehot, w1e_ref[...], preferred_element_type=jnp.float32)
    h = jnp.maximum(h + b1_ref[...], 0.0)                           # bias + ReLU, f32 VPU

    # linear2 (bf16 MXU operands, f32 accumulate)
    logits = jnp.dot(h.astype(w2_ref.dtype), w2_ref[...],
                     preferred_element_type=jnp.float32) + b2_ref[...]

    # log_softmax along dim=1 (numerically stable, f32)
    m = jnp.max(logits, axis=-1, keepdims=True)
    s = logits - m
    lse = jnp.log(jnp.sum(jnp.exp(s), axis=-1, keepdims=True))
    out_ref[...] = (s - lse).astype(out_ref.dtype)


def ngram_forward(inputs, emb, w1, b1, w2, b2, *, tile_b=TILE_B):
    """inputs: (B, CONTEXT_SIZE) int token ids. Returns (B, VOCAB) f32 log-probs;
    row b equals the PyTorch module's forward(inputs[b]) (bf16 weight storage)."""
    B, C = inputs.shape
    V, E = emb.shape
    H = w1.shape[1]
    assert w1.shape[0] == C * E

    # Fuse the embedding gather into linear1: W1eff[c] = emb @ w1[c*E:(c+1)*E, :],
    # stacked to (C*V, H).  Amortizes over the whole batch; hoist if called in a loop.
    w1eff = jnp.einsum('ve,ceh->cvh',
                       emb.astype(jnp.float32),
                       w1.astype(jnp.float32).reshape(C, E, H))
    w1eff = w1eff.reshape(C * V, H).astype(jnp.bfloat16)
    w2_b = w2.astype(jnp.bfloat16)
    b1_f = b1.astype(jnp.float32).reshape(1, H)
    b2_f = b2.astype(jnp.float32).reshape(1, V)

    # Pad the batch to a multiple of the tile instead of shrinking the tile.
    tile_b = min(tile_b, _round_up(B, 8))
    Bp = _round_up(B, tile_b)
    idx = inputs.astype(jnp.int32)
    if Bp != B:
        idx = jnp.pad(idx, ((0, Bp - B), (0, 0)))

    def resident(shape):
        # Constant index_map -> block DMA'd once, VMEM-resident across the grid.
        return pl.BlockSpec(shape, lambda i: (0, 0))

    out = pl.pallas_call(
        ngram_kernel,
        out_shape=jax.ShapeDtypeStruct((Bp, V), jnp.float32),
        grid_spec=pltpu.PrefetchScalarGridSpec(
            num_scalar_prefetch=0,
            grid=(Bp // tile_b,),
            in_specs=[
                pl.BlockSpec((tile_b, C), lambda i: (i, 0)),   # token ids
                resident(w1eff.shape),   # (C*V, H) bf16
                resident(b1_f.shape),    # (1, H)   f32
                resident(w2_b.shape),    # (H, V)   bf16
                resident(b2_f.shape),    # (1, V)   f32
            ],
            out_specs=pl.BlockSpec((tile_b, V), lambda i: (i, 0)),
        ),
        compiler_params=pltpu.CompilerParams(
            dimension_semantics=("parallel",)),   # v7x: batch tiles split across 2 TCs
    )(idx, w1eff, b1_f, w2_b, b2_f)
    return out[:B]


if __name__ == "__main__":
    key = jax.random.PRNGKey(0)
    k_emb, k_w1, k_b1, k_w2, k_b2, k_idx = jax.random.split(key, 6)

    # Deterministic synthetic parameters (shapes from the module's __init__).
    emb = jax.random.normal(k_emb, (VOCAB_SIZE, EMBEDDING_DIM), jnp.float32)
    in_dim = CONTEXT_SIZE * EMBEDDING_DIM
    w1 = jax.random.normal(k_w1, (in_dim, HIDDEN), jnp.float32) / jnp.sqrt(in_dim)
    b1 = jax.random.normal(k_b1, (1, HIDDEN), jnp.float32) * 0.01
    w2 = jax.random.normal(k_w2, (HIDDEN, VOCAB_SIZE), jnp.float32) / jnp.sqrt(HIDDEN)
    b2 = jax.random.normal(k_b2, (1, VOCAB_SIZE), jnp.float32) * 0.01

    # A batch of contexts, each of CONTEXT_SIZE token ids.
    inputs = jax.random.randint(
        k_idx, (BATCH, CONTEXT_SIZE), 0, VOCAB_SIZE, jnp.int32)

    log_probs = ngram_forward(inputs, emb, w1, b1, w2, b2)
    log_probs = jax.block_until_ready(log_probs)
    assert log_probs.shape == (BATCH, VOCAB_SIZE)

    # Reference 1: same bf16-stored weights, f32 math (matches the kernel path).
    C, E, H, V = CONTEXT_SIZE, EMBEDDING_DIM, HIDDEN, VOCAB_SIZE
    w1eff = jnp.einsum('ve,ceh->cvh', emb, w1.reshape(C, E, H)).reshape(C * V, H)
    w1eff_f = w1eff.astype(jnp.bfloat16).astype(jnp.float32)
    w2_f = w2.astype(jnp.bfloat16).astype(jnp.float32)
    h_pre = sum(w1eff_f[c * V + inputs[:, c]] for c in range(C)) + b1
    h_ref = jnp.maximum(h_pre, 0.0).astype(jnp.bfloat16).astype(jnp.float32)
    ref_bf16 = jax.nn.log_softmax(h_ref @ w2_f + b2, axis=1)
    assert jnp.allclose(log_probs, ref_bf16, atol=2e-3, rtol=2e-3), \
        "mismatch vs bf16-weight reference"

    # Reference 2: pure-f32 PyTorch semantics (loose tolerance; bf16 weight storage
    # perturbs logits by ~1e-2).
    ref_h = jnp.maximum(emb[inputs].reshape(BATCH, -1) @ w1 + b1, 0.0)
    ref_f32 = jax.nn.log_softmax(ref_h @ w2 + b2, axis=1)
    assert jnp.allclose(log_probs, ref_f32, atol=1e-1, rtol=1e-1), \
        "mismatch vs f32 module reference"

    print("KERNEL_OK")
</pallas_src>

<mosaic_0001>
module attributes {stable_mosaic.version = 11 : i64} {
  func.func @ngram_kernel(%arg0: i32, %arg1: memref<128x2xi32, #tpu.memory_space<vmem>>, %arg2: memref<512x128xbf16, #tpu.memory_space<vmem>>, %arg3: memref<1x128xf32, #tpu.memory_space<vmem>>, %arg4: memref<128x256xbf16, #tpu.memory_space<vmem>>, %arg5: memref<1x256xf32, #tpu.memory_space<vmem>>, %arg6: memref<128x256xf32, #tpu.memory_space<vmem>>) attributes {dimension_semantics = [#tpu.dimension_semantics<parallel>], iteration_bounds = array<i64: 2>, scalar_prefetch = 0 : i64, scratch_operands = 0 : i64, tpu.core_type = #tpu.core_type<tc>, window_params = [{transform_indices = @transform_0, window_bounds = array<i64: 128, 2>}, {pipeline_mode = #tpu.pipeline_mode<synchronous>, transform_indices = @transform_1, window_bounds = array<i64: 512, 128>}, {pipeline_mode = #tpu.pipeline_mode<synchronous>, transform_indices = @transform_2, window_bounds = array<i64: 1, 128>}, {pipeline_mode = #tpu.pipeline_mode<synchronous>, transform_indices = @transform_3, window_bounds = array<i64: 128, 256>}, {pipeline_mode = #tpu.pipeline_mode<synchronous>, transform_indices = @transform_4, window_bounds = array<i64: 1, 256>}, {transform_indices = @transform_5, window_bounds = array<i64: 128, 256>}]} {
    %c0 = arith.constant 0 : index
    %c0_0 = arith.constant 0 : index
    %0 = vector.load %arg1[%c0, %c0_0] : memref<128x2xi32, #tpu.memory_space<vmem>>, vector<128x2xi32>
    %1 = tpu.iota {dimensions = array<i32: 1>} : vector<128x512xi32>
    %2 = vector.extract_strided_slice %0 {offsets = [0, 0], sizes = [128, 1], strides = [1, 1]} : vector<128x2xi32> to vector<128x1xi32>
    %c0_i32 = arith.constant 0 : i32
    %3 = vector.broadcast %c0_i32 : i32 to vector<128x1xi32>
    %4 = arith.addi %2, %3 : vector<128x1xi32>
    %5 = vector.broadcast %4 : vector<128x1xi32> to vector<128x512xi32>
    %6 = arith.cmpi eq, %1, %5 : vector<128x512xi32>
    %7 = vector.extract_strided_slice %0 {offsets = [0, 1], sizes = [128, 1], strides = [1, 1]} : vector<128x2xi32> to vector<128x1xi32>
    %c256_i32 = arith.constant 256 : i32
    %8 = vector.broadcast %c256_i32 : i32 to vector<128x1xi32>
    %9 = arith.addi %7, %8 : vector<128x1xi32>
    %10 = vector.broadcast %9 : vector<128x1xi32> to vector<128x512xi32>
    %11 = arith.cmpi eq, %1, %10 : vector<128x512xi32>
    %12 = arith.ori %6, %11 : vector<128x512xi1>
    %13 = arith.extui %12 : vector<128x512xi1> to vector<128x512xi32>
    %14 = arith.sitofp %13 : vector<128x512xi32> to vector<128x512xf32>
    %15 = arith.truncf %14 : vector<128x512xf32> to vector<128x512xbf16>
    %c0_1 = arith.constant 0 : index
    %c0_2 = arith.constant 0 : index
    %16 = vector.load %arg2[%c0_1, %c0_2] : memref<512x128xbf16, #tpu.memory_space<vmem>>, vector<512x128xbf16>
    %cst = arith.constant dense<0.000000e+00> : vector<128x128xf32>
    %17 = tpu.matmul %15, %16, %cst {dimension_numbers = #tpu.dot_dimension_numbers<[1], [0], [0], [1], [0, 0, 1, 1], [], []>} : vector<128x512xbf16>, vector<512x128xbf16>, vector<128x128xf32> -> vector<128x128xf32>
    %c0_3 = arith.constant 0 : index
    %c0_4 = arith.constant 0 : index
    %18 = vector.load %arg3[%c0_3, %c0_4] : memref<1x128xf32, #tpu.memory_space<vmem>>, vector<1x128xf32>
    %19 = vector.broadcast %18 : vector<1x128xf32> to vector<128x128xf32>
    %20 = arith.addf %17, %19 : vector<128x128xf32>
    %cst_5 = arith.constant 0.000000e+00 : f32
    %21 = vector.broadcast %cst_5 : f32 to vector<128x128xf32>
    %22 = arith.maximumf %20, %21 : vector<128x128xf32>
    %23 = arith.truncf %22 : vector<128x128xf32> to vector<128x128xbf16>
    %c0_6 = arith.constant 0 : index
    %c0_7 = arith.constant 0 : index
    %24 = vector.load %arg4[%c0_6, %c0_7] : memref<128x256xbf16, #tpu.memory_space<vmem>>, vector<128x256xbf16>
    %cst_8 = arith.constant dense<0.000000e+00> : vector<128x256xf32>
    %25 = tpu.matmul %23, %24, %cst_8 {dimension_numbers = #tpu.dot_dimension_numbers<[1], [0], [0], [1], [0, 0, 1, 1], [], []>} : vector<128x128xbf16>, vector<128x256xbf16>, vector<128x256xf32> -> vector<128x256xf32>
    %c0_9 = arith.constant 0 : index
    %c0_10 = arith.constant 0 : index
    %26 = vector.load %arg5[%c0_9, %c0_10] : memref<1x256xf32, #tpu.memory_space<vmem>>, vector<1x256xf32>
    %27 = vector.broadcast %26 : vector<1x256xf32> to vector<128x256xf32>
    %28 = arith.addf %25, %27 : vector<128x256xf32>
    %cst_11 = arith.constant dense<0xFF800000> : vector<128xf32>
    %29 = vector.multi_reduction <maximumf>, %28, %cst_11 [1] : vector<128x256xf32> to vector<128xf32>
    %30 = vector.shape_cast %29 : vector<128xf32> to vector<128x1xf32>
    %31 = vector.broadcast %30 : vector<128x1xf32> to vector<128x256xf32>
    %32 = arith.subf %28, %31 : vector<128x256xf32>
    %33 = math.exp %32 : vector<128x256xf32>
    %cst_12 = arith.constant dense<0.000000e+00> : vector<128xf32>
    %34 = vector.multi_reduction <add>, %33, %cst_12 [1] : vector<128x256xf32> to vector<128xf32>
    %35 = vector.shape_cast %34 : vector<128xf32> to vector<128x1xf32>
    %36 = math.log %35 : vector<128x1xf32>
    %37 = vector.broadcast %36 : vector<128x1xf32> to vector<128x256xf32>
    %38 = arith.subf %32, %37 : vector<128x256xf32>
    %c0_13 = arith.constant 0 : index
    %c0_14 = arith.constant 0 : index
    %39 = vector.load %arg6[%c0_13, %c0_14] : memref<128x256xf32, #tpu.memory_space<vmem>>, vector<128x256xf32>
    tpu.vector_store %arg6[%c0_13, %c0_14], %38 {strides = array<i32>} : memref<128x256xf32, #tpu.memory_space<vmem>>, vector<128x256xf32>,
    return
  }
  func.func @transform_0(%arg0: i32) -> (i32, i32) {
    %c0_i32 = arith.constant 0 : i32
    %c0_i32_0 = arith.constant 0 : i32
    return %arg0, %c0_i32 : i32, i32
  }
  func.func @transform_1(%arg0: i32) -> (i32, i32) {
    %c0_i32 = arith.constant 0 : i32
    %c0_i32_0 = arith.constant 0 : i32
    %c0_i32_1 = arith.constant 0 : i32
    return %c0_i32, %c0_i32_0 : i32, i32
  }
  func.func @transform_2(%arg0: i32) -> (i32, i32) {
    %c0_i32 = arith.constant 0 : i32
    %c0_i32_0 = arith.constant 0 : i32
    %c0_i32_1 = arith.constant 0 : i32
    return %c0_i32, %c0_i32_0 : i32, i32
  }
  func.func @transform_3(%arg0: i32) -> (i32, i32) {
    %c0_i32 = arith.constant 0 : i32
    %c0_i32_0 = arith.constant 0 : i32
    %c0_i32_1 = arith.constant 0 : i32
    return %c0_i32, %c0_i32_0 : i32, i32
  }
  func.func @transform_4(%arg0: i32) -> (i32, i32) {
    %c0_i32 = arith.constant 0 : i32
    %c0_i32_0 = arith.constant 0 : i32
    %c0_i32_1 = arith.constant 0 : i32
    return %c0_i32, %c0_i32_0 : i32, i32
  }
  func.func @transform_5(%arg0: i32) -> (i32, i32) {
    %c0_i32 = arith.constant 0 : i32
    %c0_i32_0 = arith.constant 0 : i32
    return %arg0, %c0_i32 : i32, i32
  }
}

</mosaic_0001>

<bundles_post_ra>
// kernel: tpu_custom_call.1
= control target key start
LH: loop header
LB: loop body
LE: loop exit
PB: predicated region body
PF: predicated region fallthrough
CT: control target
= control target key end

     0   :  { %10 = vsyncpa [#allocation3], 0  ;;  %s3680_s0 = inlined_call_operand.vmem [shape: s32[256,2], index: 0, kind: input, shape index: {}]   ;;  %s3681_s1 = inlined_call_operand.vmem [shape: bf16[512,128], index: 1, kind: input, shape index: {}]   ;;  %s3682_s2 = inlined_call_operand.vmem [shape: f32[1,128], index: 2, kind: input, shape index: {}]   ;;  %s3683_s3 = inlined_call_operand.hbm [shape: bf16[128,256], index: 3, kind: input, shape index: {}]   ;;  %s3684_s4 = inlined_call_operand.vmem [shape: f32[1,256], index: 4, kind: input, shape index: {}]   ;;  %s3685_s5 = inlined_call_operand.hbm [shape: f32[256,256], index: 5, kind: output, shape index: {}]  }
   0x1   :  { %11 = vsyncpa [#allocation4], 0 }
   0x2   :  { %13 = vsyncpa [#allocation4 + $0x1], 0  ;;  %s2508_s18 = smov 0   ;;  %s2510_s19 = smov 0  }
   0x3   :  { %s2512_s20 = smov 0   ;;  %s2514_s21 = smov 0  }
   0x4 LB: > { %s2529_s22 = sadd.s32 4294967295, %s2467_s21   ;;  %s1806_s23 = sadd.s32 4294967294, %s2467_s21   ;;  %s2467_s21 = sphi %s2514_s21, %s3811_s21   ;;  %s2463_s20 = sphi %s2512_s20, %s3810_s20   ;;  %s2459_s19 = sphi %s2510_s19, %s3809_s19   ;;  %s2455_s18 = sphi %s2508_s18, %s3808_s18  }
   0x5   : > { %s2533_s24 = sadd.s32 1, %s2467_s21   ;;  %s136_s25 = sadd.s32 1, %s2463_s20 }
   0x6   : > { %s133_s26 = ssub.s32 %s2467_s21, %s2533_s24  ;;  %p146_p0 = scmp.ne.s32.totalorder %s2463_s20, %s2459_s19 }
   0x7   : > { %p134_p1 = scmp.eq.s32.totalorder %s133_s26, 0  ;;  %p147_p2 = scmp.eq.s32.totalorder %s2529_s22, 1 }
   0x8   : > { %p152_p3 = scmp.ne.s32.totalorder %s2459_s19, %s2455_s18  ;;  %p153_p4 = scmp.eq.s32.totalorder %s1806_s23, 1 }
   0x9   : > { %s2544_s27 = scalar_select %p134_p1, %s2463_s20, %s136_s25  }
   0xa   : > { %p2546_p5 = por %p147_p2, %p146_p0  ;;  %p2550_p6 = por %p153_p4, %p152_p3 }
   0xb   : > { %p1807_p7 = scmp.ge.s32.totalorder %s2467_s21, 1  ;;  %p160_p8 = scmp.lt.s32.totalorder %s2467_s21, 3 }
   0xc   : > { %s3699_s28 = scalar_select %p2546_p5, 1, 0 }
   0xd   : > { %s3700_s29 = scalar_select %p2550_p6, 1, 0 }
   0xe   : > { %p3686_p9 = scmp.eq.s32.totalorder %s2529_s22, 0  ;;  %p2557_p10 = pnand %p1807_p7, %p160_p8 }
   0xf   : > { %s2469_s6 = smov [#allocation2]   ;;  %s2373_s11 = scalar_lea.hbm %s3683_s3, 2048 }
  0x10   : > { %s3701_s30 = scalar_select %p2557_p10, 1, 0 }
  0x11   : > { %s178_s7 = sshll.u32 %s2469_s6, 4  ;;  %p2150_p11 = pneg %p2557_p10  ;;  %s179_s7 = int_to_ptr.vmem [resolvable:$true] %s178_s7 }
  0x12   : > { %p2374_p13 = scmp.ne.s32.totalorder %s3683_s3, %s2373_s11  ;;  %p2380_p3 = scmp.lt.u32.totalorder %s2373_s11, %s3683_s3 }
  0x13   : > { %p2565_p12 = pnand %p3686_p9, %p2150_p11 }
  0x15   : > { %p2375_p0 = pneg %p2565_p12 }
  0x17   : > { %p2376_p1 = pnand %p2375_p0, %p2374_p13 }
  0x19   : > { %p2377_p2 = pneg %p2376_p1 }
  0x1b   : > { %p2382_p4 = pnand %p2380_p3, %p2377_p2 }
  0x1d   : > { %2385 = shalt.err (!%p2382_p4)
}
  0x1e   : > { %s2386_s16 = scalar_lea.vmem %s179_s7, 2048  ;;  %p2394_p9 = scmp.lt.s32.totalorder %s179_s7, %s179_s7 }
  0x1f   : > { %p2387_p7 = scmp.ne.s32.totalorder %s179_s7, %s2386_s16  ;;  %p2395_p6 = scmp.lt.s32.totalorder %s2386_s16, %s2386_s16 }
  0x21   : > { %p2389_p8 = pnand %p2387_p7, %p2375_p0  ;;  %p2396_p5 = por %p2395_p6, %p2394_p9 }
  0x23   : > { %p2390_p11 = pneg %p2389_p8 }
  0x25   : > { %p2397_p10 = pnand %p2396_p5, %p2390_p11 }
  0x27   : > { %2400 = shalt.err (!%p2397_p10)
}
  0x28   : > { %s2470_s17 = smov 128   ;;  %s2471_s23 = smov 8  }
  0x29   : > { %2153 = dma.hbm_to_vmem [thread:$0]  (!%p2565_p12), %s3683_s3, 2048, %s179_s7, [#allocation3], %s2470_s17, %s2470_s17, %s2471_s23  }
  0x2a   : > { %p3703_p13 = scmp.ne.s32.totalorder %s3701_s30, 0 }
  0x2b   : > { %p3704_p1 = scmp.eq.s32.totalorder (!%p3703_p13), %s2529_s22, 0 }
  0x2c   : > { %206 = sbr.rel (%p3703_p13) target bundleno = 1092 (0x444), region = 40 }
  0x33   : > { %2446 = dma.done.wait (%p3704_p1), [#allocation3], 2048   ;;  %p3705_p0 = pmov %p3704_p1 }
  0x34   : > { %s1813_s6 = sshll.u32 %s2529_s22, 4  ;;  %v2472_v0 = vmov 0   ;;  %v2473_v5 = vmov 1   ;;  %v2221_v8 = vld [vmem:[%s3681_s1 + $0x40] sm:$0xff]   ;;  %v2223_v10 = vld [vmem:[%s3681_s1 + $0x48] sm:$0xff]   ;;  %v2225_v15 = vld [vmem:[%s3681_s1 + $0x50] sm:$0xff]   ;;  %v258_v51 = vlaneseq }
  0x35   : > { %2448 = vsyncadd (%p3705_p0), [#allocation3], 4294965248  ;;  %2202 = vset.pattern.permute.xlu1 %v2472_v0  ;;  %2201 = vset.pattern.permute.xlu0 %v2472_v0  ;;  %p235_p5 = scmp.lt.s32.totalorder %s1813_s6, 31  ;;  %v2222_v9 = vld [vmem:[%s3681_s1] sm:$0xff]   ;;  %v2224_v12 = vld [vmem:[%s3681_s1 + $0x8] sm:$0xff]   ;;  %s231_s15 = sand.u32 1, %s2459_s19  }
  0x36   : > { %2128 = vmatprep.subr.bf16.mxu1 %v2221_v8  ;;  %2000 = vmatprep.subr.bf16.mxu0 %v2221_v8  ;;  %v2226_v16 = vld [vmem:[%s3681_s1 + $0x10] sm:$0xff]   ;;  %v2227_v18 = vld [vmem:[%s3681_s1 + $0x58] sm:$0xff]   ;;  %v2229_v21 = vld [vmem:[%s3681_s1 + $0x60] sm:$0xff]   ;;  %v2685_v52 = vand.u32 127, %v258_v51  ;;  %s1812_s16 = sshll.u32 %s231_s15, 8  ;;  %s1999_s23 = sshll.u32 %s2529_s22, 12 }
  0x37   : > { %s3813_s6 = smov (!%p235_p5, %s1813_s6), 31  ;;  %2136 = vmatpush3.bf16.msra.mxu1 %v2222_v9  ;;  %2001 = vmatpush3.bf16.msra.mxu0 %v2222_v9  ;;  %v2228_v20 = vld [vmem:[%s3681_s1 + $0x18] sm:$0xff]   ;;  %v2230_v24 = vld [vmem:[%s3681_s1 + $0x20] sm:$0xff]   ;;  %v2231_v25 = vld [vmem:[%s3681_s1 + $0x68] sm:$0xff]   ;;  %s3564_s17 = scalar_lea.vmem [#allocation5], %s1812_s16 }
  0x38   : > { %s1814_s8 = sshll.u32 %s3813_s6, 3  ;;  %2129 = vmatprep.subr.bf16.mxu1 %v2223_v10  ;;  %2002 = vmatprep.subr.bf16.mxu0 %v2223_v10  ;;  %v2232_v28 = vld [vmem:[%s3681_s1 + $0x28] sm:$0xff]   ;;  %v2233_v29 = vld [vmem:[%s3681_s1 + $0x70] sm:$0xff]   ;;  %v2235_v34 = vld [vmem:[%s3681_s1 + $0x78] sm:$0xff]   ;;  %v2690_v55 = vadd.s32 128, %v2685_v52  ;;  %v2696_v57 = vadd.s32 384, %v2685_v52 }
  0x39   : > { %s2597_s30 = scalar_lea.vmem %s3680_s0, %s1814_s8  ;;  %v2234_v32 = vld [vmem:[%s3681_s1 + $0x30] sm:$0xff]   ;;  %v2236_v35 = vld [vmem:[%s3681_s1 + $0x38] sm:$0xff]   ;;  %v2237_v37 = vld [vmem:[%s3681_s1 + $0xc0] sm:$0xff]   ;;  %v2700_v59 = vadd.s32 256, %v2685_v52  ;;  %s1732_s25 = sshll.u32 %s3564_s17, 4  ;;  %s3629_s25 = int_to_ptr.vmem [resolvable:$true] %s1732_s25 }
  0x3a   : > { %v253_v1 = vld [vmem:[%s2597_s30 + $0x58] sm:$0xff]  ;;  %v250_v2 = vld [vmem:[%s2597_s30 + $0x40] sm:$0xff]  ;;  %v251_v4 = vld [vmem:[%s2597_s30 + $0x48] sm:$0xff]  ;;  %s3627_s8 = scalar_lea.hbm %s3685_s5, %s1999_s23  ;;  %s3639_s22 = scalar_lea.sflag [#allocation4], %s231_s15 }
  0x3b   : > { %297 = vperm.xlu1 %2202, %v253_v1   ;;  %288 = vperm.xlu0 %2201, %v250_v2   ;;  %v383_v3 = vadd.s32 256, %v250_v2  ;;  %v252_v6 = vld [vmem:[%s2597_s30 + $0x50] sm:$0xff]  ;;  %v384_v7 = vadd.s32 256, %v251_v4  ;;  %v386_v11 = vadd.s32 256, %v253_v1  ;;  %v254_v19 = vld [vmem:[%s2597_s30 + $0x60] sm:$0xff]  ;;  %v255_v22 = vld [vmem:[%s2597_s30 + $0x68] sm:$0xff] }
  0x3c   : > { %v385_v13 = vadd.s32 256, %v252_v6  ;;  %v256_v14 = vld [vmem:[%s2597_s30 + $0x70] sm:$0xff]  ;;  %2137 = vmatpush3.bf16.msra.mxu1 %v2224_v12  ;;  %2003 = vmatpush3.bf16.msra.mxu0 %v2224_v12  ;;  %v387_v23 = vadd.s32 256, %v254_v19  ;;  %v388_v26 = vadd.s32 256, %v255_v22  ;;  %v243_v30 = vld [vmem:[%s2597_s30 + $0x8] sm:$0xff]  ;;  %v257_v33 = vld [vmem:[%s2597_s30 + $0x78] sm:$0xff] }
  0x3d   : > { %v389_v17 = vadd.s32 256, %v256_v14  ;;  %2130 = vmatprep.subr.bf16.mxu1 %v2225_v15  ;;  %2004 = vmatprep.subr.bf16.mxu0 %v2225_v15  ;;  %v244_v27 = vld [vmem:[%s2597_s30 + $0x10] sm:$0xff]  ;;  %v390_v36 = vadd.s32 256, %v257_v33  ;;  %v242_v38 = vld [vmem:[%s2597_s30] sm:$0xff]  ;;  %v247_v39 = vld [vmem:[%s2597_s30 + $0x28] sm:$0xff]  ;;  %v376_v42 = vadd.s32 256, %v243_v30 }
  0x3e   : > { %v377_v31 = vadd.s32 256, %v244_v27  ;;  %v375_v40 = vadd.s32 256, %v242_v38  ;;  %v248_v41 = vld [vmem:[%s2597_s30 + $0x30] sm:$0xff]  ;;  %v245_v44 = vld [vmem:[%s2597_s30 + $0x18] sm:$0xff]  ;;  %v246_v46 = vld [vmem:[%s2597_s30 + $0x20] sm:$0xff]  ;;  %v380_v48 = vadd.s32 256, %v247_v39 }
  0x3f   : > { %2203 = vset.pattern.permute.xlu1 %v2473_v5  ;;  %291 = vperm.xlu0 %2201, %v251_v4   ;;  %v381_v43 = vadd.s32 256, %v248_v41  ;;  %v378_v45 = vadd.s32 256, %v245_v44  ;;  %v379_v47 = vadd.s32 256, %v246_v46  ;;  %v249_v49 = vld [vmem:[%s2597_s30 + $0x38] sm:$0xff]  ;;  %v3710_v1 = vmov 0  ;;  %v2240_v8 = vld [vmem:[%s3681_s1 + $0x88] sm:$0xff]  }
  0x40   : > { %416 = vperm.xlu1 %2203, %v383_v3   ;;  %2138 = vmatpush3.bf16.msra.mxu1 %v2226_v16  ;;  %v382_v50 = vadd.s32 256, %v249_v49  ;;  %v3712_v2 = vmov 0  ;;  %v2238_v3 = vld [vmem:[%s3681_s1 + $0x80] sm:$0xff]   ;;  %v2241_v10 = vld [vmem:[%s3681_s1 + $0xd0] sm:$0xff]   ;;  %s2401_s7 = scalar_lea.vmem %s3629_s25, 4096  ;;  %p3806_p9 = scmp.ne.s32.totalorder %s3699_s28, 0 }
  0x41   : > { %2131 = vmatprep.subr.bf16.mxu1 %v2227_v18  ;;  %2005 = vmatpush3.bf16.msra.mxu0 %v2226_v16  ;;  %v2242_v12 = vld [vmem:[%s3681_s1 + $0x90] sm:$0xff]   ;;  %p2402_p6 = scmp.ne.s32.totalorder %s3629_s25, %s2401_s7  ;;  %s2475_s9 = smov [#allocation5]  }
  0x42   : > { %2006 = vmatprep.subr.bf16.mxu0 %v2227_v18  ;;  %v2244_v18 = vld [vmem:[%s3681_s1 + $0x98] sm:$0xff]   ;;  %s2405_s10 = sshll.u32 %s2475_s9, 4  ;;  %s2406_s10 = int_to_ptr.vmem [resolvable:$false] %s2405_s10 }
  0x43   : > { %294 = vperm.xlu0 %2201, %v252_v6   ;;  %p2403_p10 = pnand %p2402_p6, %p3806_p9  ;;  %s2407_s11 = scalar_lea.vmem %s2406_s10, 8192 }
  0x44   : > { %419 = vperm.xlu1 %2203, %v384_v7   ;;  %2139 = vmatpush3.bf16.msra.mxu1 %v2228_v20  ;;  %v2239_v7 = vld [vmem:[%s3681_s1 + $0xc8] sm:$0xff]   ;;  %p2408_p2 = scmp.lt.s32.totalorder %s3629_s25, %s2406_s10  ;;  %p2409_p3 = scmp.lt.s32.totalorder %s2407_s11, %s2401_s7 }
  0x45   : > { %2132 = vmatprep.subr.bf16.mxu1 %v2229_v21  ;;  %2007 = vmatpush3.bf16.msra.mxu0 %v2228_v20  ;;  %p2404_p12 = pneg %p2403_p10 }
  0x46   : > { %2008 = vmatprep.subr.bf16.mxu0 %v2229_v21  ;;  %p2410_p4 = por %p2409_p3, %p2408_p2 }
  0x47   : > { %2204 = vset.pattern.permute.xlu0 %v2473_v5 }
  0x48   : > { %422 = vperm.xlu0 %2204, %v385_v13   ;;  %425 = vperm.xlu1 %2203, %v386_v11   ;;  %v2243_v13 = vld [vmem:[%s3681_s1 + $0xd8] sm:$0xff]   ;;  %p2411_p7 = pnand %p2410_p4, %p2404_p12 }
  0x49   : > { %2140 = vmatpush3.bf16.msra.mxu1 %v2230_v24  ;;  %2009 = vmatpush3.bf16.msra.mxu0 %v2230_v24 }
  0x4a   : > { %2133 = vmatprep.subr.bf16.mxu1 %v2231_v25  ;;  %2010 = vmatprep.subr.bf16.mxu0 %v2231_v25  ;;  %v2246_v25 = vld [vmem:[%s3681_s1 + $0xa0] sm:$0xff]  }
  0x4c   : > { %2205 = vset.pattern.permute.xlu1 %v2472_v0  ;;  %434 = vperm.xlu0 %2204, %v389_v17   ;;  %v3716_v17 = vmov 0 }
  0x4d   : > { %300 = vperm.xlu1 %2205, %v254_v19   ;;  %2141 = vmatpush3.bf16.msra.mxu1 %v2232_v28  ;;  %v2245_v19 = vld [vmem:[%s3681_s1 + $0xe0] sm:$0xff]  }
  0x4e   : > { %2134 = vmatprep.subr.bf16.mxu1 %v2233_v29  ;;  %2011 = vmatpush3.bf16.msra.mxu0 %v2232_v28 }
  0x4f   : > { %2012 = vmatprep.subr.bf16.mxu0 %v2233_v29  ;;  %v2248_v29 = vld [vmem:[%s3681_s1 + $0xa8] sm:$0xff]  }
  0x50   : > { %2208 = vset.pattern.permute.xlu0 %v2472_v0 }
  0x51   : > { %2206 = vset.pattern.permute.xlu1 %v2473_v5  ;;  %303 = vperm.xlu0 %2208, %v255_v22  }
  0x52   : > { %428 = vperm.xlu1 %2206, %v387_v23   ;;  %2142 = vmatpush3.bf16.msra.mxu1 %v2234_v32  ;;  %v3720_v23 = vmov 0 }
  0x53   : > { %2135 = vmatprep.subr.bf16.mxu1 %v2235_v34  ;;  %2013 = vmatpush3.bf16.msra.mxu0 %v2234_v32  ;;  %v3728_v32 = vmov 0 }
  0x54   : > { %2014 = vmatprep.subr.bf16.mxu0 %v2235_v34  ;;  %v3730_v34 = vmov 0 }
  0x55   : > { %306 = vperm.xlu0 %2208, %v256_v14   ;;  %v3714_v14 = vmov 0 }
  0x56   : > { %431 = vperm.xlu1 %2206, %v388_v26   ;;  %2143 = vmatpush3.bf16.msra.mxu1 %v2236_v35 }
  0x57   : > { %2064 = vmatprep.subr.bf16.mxu1 %v2237_v37  ;;  %2015 = vmatpush3.bf16.msra.mxu0 %v2236_v35  ;;  %v3732_v37 = vmov 0 }
  0x59   : > { %267 = vperm.xlu0 %2208, %v243_v30   ;;  %v2276_v30 = vld [vmem:[#allocation2 + $0x74] ss:$8 sps:$4 sm:$0xff]  }
  0x5a   : > { %2207 = vset.pattern.permute.xlu1 %v2472_v0 }
  0x5b   : > { %309 = vperm.xlu1 %2207, %v257_v33   ;;  %v2250_v33 = vld [vmem:[%s3681_s1 + $0xb0] sm:$0xff]  }
  0x5d   : > { %2213 = vset.pattern.permute.xlu0 %v2473_v5 }
  0x5e   : > { %398 = vperm.xlu0 %2213, %v377_v31   ;;  %v2249_v31 = vld [vmem:[%s3681_s1 + $0xf0] sm:$0xff]  }
  0x5f   : > { %2209 = vset.pattern.permute.xlu1 %v2473_v5 }
  0x60   : > { %437 = vperm.xlu1 %2209, %v390_v36   ;;  %v2251_v36 = vld [vmem:[%s3681_s1 + $0xf8] sm:$0xff]  }
  0x62   : > { %2214 = vset.pattern.permute.xlu0 %v2472_v0 }
  0x63   : > { %270 = vperm.xlu0 %2214, %v244_v27   ;;  %v2247_v27 = vld [vmem:[%s3681_s1 + $0xe8] sm:$0xff]  }
  0x64   : > { %2210 = vset.pattern.permute.xlu1 %v2472_v0 }
  0x65   : > { %264 = vperm.xlu1 %2210, %v242_v38  }
  0x67   : > { %279 = vperm.xlu0 %2214, %v247_v39   ;;  %v2252_v39 = vld [vmem:[%s3681_s1 + $0xb8] sm:$0xff]  }
  0x69   : > { %2211 = vset.pattern.permute.xlu1 %v2473_v5 }
  0x6a   : > { %392 = vperm.xlu1 %2211, %v375_v40  }
  0x6b   : > { %282 = vperm.xlu0 %2214, %v248_v41  }
  0x6e   : > { %395 = vperm.xlu1 %2211, %v376_v42  }
  0x6f   : > { %2219 = vset.pattern.permute.xlu0 %v2473_v5 }
  0x70   : > { %410 = vperm.xlu0 %2219, %v381_v43   ;;  %v3734_v43 = vmov 0 }
  0x72   : > { %2212 = vset.pattern.permute.xlu1 %v2472_v0 }
  0x73   : > { %273 = vperm.xlu1 %2212, %v245_v44   ;;  %v3736_v44 = vmov 0 }
  0x77   : > { %2215 = vset.pattern.permute.xlu1 %v2473_v5 }
  0x78   : > { %401 = vperm.xlu1 %2215, %v378_v45  }
  0x7c   : > { %2216 = vset.pattern.permute.xlu1 %v2472_v0 }
  0x7d   : > { %276 = vperm.xlu1 %2216, %v246_v46  }
  0x81   : > { %2217 = vset.pattern.permute.xlu1 %v2473_v5 }
  0x82   : > { %404 = vperm.xlu1 %2217, %v379_v47  }
  0x86   : > { %407 = vperm.xlu1 %2217, %v380_v48  }
  0x8a   : > { %2218 = vset.pattern.permute.xlu1 %v2472_v0 }
  0x8b   : > { %285 = vperm.xlu1 %2218, %v249_v49   ;;  %v3742_v49 = vmov 0 }
  0x8f   : > { %2220 = vset.pattern.permute.xlu1 %v2473_v5  ;;  %v2474_v5 = vmov 1.0|1.0  }
  0x90   : > { %413 = vperm.xlu1 %2220, %v382_v50   ;;  %v3744_v50 = vmov 0 }
  0xba   : > { %v2687_v53 = vpop.permute.xlu1 %297  ;;  %v289_v54 = vpop.permute.xlu0 %288 }
  0xbb   : > { %vm344_vm0 = vcmp.eq.s32.totalorder %v2690_v55, %v289_v54  ;;  %vm343_vm1 = vcmp.eq.s32.totalorder %v2685_v52, %v289_v54  ;;  %vm346_vm4 = vcmp.eq.s32.totalorder %v2696_v57, %v289_v54  ;;  %vm345_vm7 = vcmp.eq.s32.totalorder %v2700_v59, %v289_v54 }
  0xbc   : > { %v3748_v54 = vmov 0 }
  0xbe   : > { %v2692_v56 = vpop.permute.xlu0 %291 }
  0xbf   : > { %v417_v58 = vpop.permute.xlu1 %416  ;;  %vm348_vm9 = vcmp.eq.s32.totalorder %v2690_v55, %v2692_v56  ;;  %vm347_vm13 = vcmp.eq.s32.totalorder %v2685_v52, %v2692_v56 }
  0xc0   : > { %vm472_vm2 = vcmp.eq.s32.totalorder %v2690_v55, %v417_v58  ;;  %vm471_vm3 = vcmp.eq.s32.totalorder %v2685_v52, %v417_v58  ;;  %vm474_vm5 = vcmp.eq.s32.totalorder %v2696_v57, %v417_v58  ;;  %vm473_vm8 = vcmp.eq.s32.totalorder %v2700_v59, %v417_v58 }
  0xc1   : > { %vm2706_vm6 = vmor %vm344_vm0, %vm472_vm2 }
  0xc2   : > { %v2712_v61 = vpop.permute.xlu0 %294  ;;  %vm2716_vm10 = vmor %vm343_vm1, %vm471_vm3 }
  0xc3   : > { %v420_v63 = vpop.permute.xlu1 %419  ;;  %vm2720_vm11 = vmor %vm346_vm4, %vm474_vm5  ;;  %vm352_vm2 = vcmp.eq.s32.totalorder %v2690_v55, %v2712_v61 }
  0xc4   : > { %v3711_v1 = vsel %vm2720_vm11, 4294967295, %v3710_v1  ;;  %vm476_vm12 = vcmp.eq.s32.totalorder %v2690_v55, %v420_v63  ;;  %vm475_vm14 = vcmp.eq.s32.totalorder %v2685_v52, %v420_v63  ;;  %vm2728_vm15 = vmor %vm345_vm7, %vm473_vm8  ;;  %vm356_vm7 = vcmp.eq.s32.totalorder %v2690_v55, %v2687_v53 }
  0xc5   : > { %v3713_v2 = vsel %vm2728_vm15, 4294967295, %v3712_v2  ;;  %vm540_vm0 = vmor %vm348_vm9, %vm476_vm12  ;;  %vm351_vm9 = vcmp.eq.s32.totalorder %v2685_v52, %v2712_v61 }
  0xc6   : > { %vm1928_vm1 = vmpackc.low %vm540_vm0, %vm2706_vm6  ;;  %vm355_vm0 = vcmp.eq.s32.totalorder %v2685_v52, %v2687_v53 }
  0xc7   : > { %v2739_v4 = vpop.permute.xlu0 %422  ;;  %1929 = vmatprep.mubr.msk.bf16.mxu1 %vm1928_vm1, %v2474_v5  ;;  %v2742_v6 = vpop.permute.xlu1 %425  ;;  %vm539_vm3 = vmor %vm347_vm13, %vm475_vm14 }
  0xc8   : > { %vm1930_vm4 = vmpackc.low %vm539_vm3, %vm2716_vm10  ;;  %vm480_vm5 = vcmp.eq.s32.totalorder %v2690_v55, %v2739_v4  ;;  %vm484_vm6 = vcmp.eq.s32.totalorder %v2690_v55, %v2742_v6  ;;  %vm479_vm12 = vcmp.eq.s32.totalorder %v2685_v52, %v2739_v4  ;;  %vm483_vm10 = vcmp.eq.s32.totalorder %v2685_v52, %v2742_v6 }
  0xc9   : > { %1931 = vmatmul.mubr.msk.bf16.vlgmr.msra.gmra.mrb[0].mxu1 %vm1930_vm4, %v2474_v5  ;;  %vm544_vm8 = vmor %vm352_vm2, %vm480_vm5  ;;  %vm350_vm2 = vcmp.eq.s32.totalorder %v2696_v57, %v2692_v56  ;;  %vm478_vm3 = vcmp.eq.s32.totalorder %v2696_v57, %v420_v63 }
  0xca   : > { %vm548_vm13 = vmor %vm356_vm7, %vm484_vm6  ;;  %2065 = vmatpush3.bf16.msra.mxu1 %v2238_v3  ;;  %vm349_vm6 = vcmp.eq.s32.totalorder %v2700_v59, %v2692_v56  ;;  %vm477_vm7 = vcmp.eq.s32.totalorder %v2700_v59, %v420_v63  ;;  %v3750_v56 = vmov 0 }
  0xcb   : > { %vm1932_vm14 = vmpackc.low %vm548_vm13, %vm544_vm8  ;;  %v2765_v9 = vpop.permute.xlu0 %434  ;;  %2066 = vmatprep.subr.bf16.mxu1 %v2239_v7 }
  0xcc   : > { %1933 = vmatprep.mubr.msk.bf16.mxu1 %vm1932_vm14, %v2474_v5  ;;  %v2771_v11 = vpop.permute.xlu1 %300  ;;  %vm543_vm1 = vmor %vm351_vm9, %vm479_vm12  ;;  %vm354_vm14 = vcmp.eq.s32.totalorder %v2696_v57, %v2712_v61 }
  0xcd   : > { %vm547_vm4 = vmor %vm355_vm0, %vm483_vm10  ;;  %vm482_vm0 = vcmp.eq.s32.totalorder %v2696_v57, %v2739_v4 }
  0xce   : > { %vm1934_vm5 = vmpackc.low %vm547_vm4, %vm543_vm1  ;;  %2067 = vmatpush3.bf16.msra.mxu1 %v2240_v8  ;;  %vm360_vm1 = vcmp.eq.s32.totalorder %v2690_v55, %v2771_v11 }
  0xcf   : > { %2068 = vmatprep.subr.bf16.mxu1 %v2241_v10  ;;  %vm2787_vm8 = vmor %vm350_vm2, %vm478_vm3 }
  0xd0   : > { %v3715_v14 = vsel %vm2787_vm8, 4294967295, %v3714_v14  ;;  %v2791_v15 = vpop.permute.xlu0 %303  ;;  %vm2800_vm12 = vmor %vm349_vm6, %vm477_vm7  ;;  %vm359_vm6 = vcmp.eq.s32.totalorder %v2685_v52, %v2771_v11 }
  0xd1   : > { %1935 = vmatmul.mubr.msk.bf16.gmra.mrb[4].mxu1 %vm1934_vm5, %v2474_v5  ;;  %v2798_v16 = vpop.permute.xlu1 %428  ;;  %v3717_v17 = vsel %vm2800_vm12, 4294967295, %v3716_v17  ;;  %vm364_vm3 = vcmp.eq.s32.totalorder %v2690_v55, %v2791_v15  ;;  %vm496_vm5 = vcmp.eq.s32.totalorder %v2690_v55, %v2765_v9  ;;  %vm2840_vm10 = vmor %vm354_vm14, %vm482_vm0  ;;  %vm495_vm12 = vcmp.eq.s32.totalorder %v2685_v52, %v2765_v9 }
  0xd2   : > { %vm488_vm13 = vcmp.eq.s32.totalorder %v2690_v55, %v2798_v16  ;;  %2069 = vmatpush3.bf16.msra.mxu1 %v2242_v12  ;;  %vm487_vm2 = vcmp.eq.s32.totalorder %v2685_v52, %v2798_v16  ;;  %v3721_v23 = vsel %vm2840_vm10, 4294967295, %v3720_v23 }
  0xd3   : > { %2070 = vmatprep.subr.bf16.mxu1 %v2243_v13  ;;  %vm2826_vm4 = vmor %vm360_vm1, %vm488_vm13  ;;  %vm363_vm1 = vcmp.eq.s32.totalorder %v2685_v52, %v2791_v15  ;;  %v3765_v13 = vmov 0 }
  0xd4   : > { %v2830_v21 = vpop.permute.xlu0 %306  ;;  %vm2850_vm15 = vmor %vm359_vm6, %vm487_vm2 }
  0xd5   : > { %v2834_v22 = vpop.permute.xlu1 %431  ;;  %vm368_vm7 = vcmp.eq.s32.totalorder %v2690_v55, %v2830_v21  ;;  %vm367_vm6 = vcmp.eq.s32.totalorder %v2685_v52, %v2830_v21 }
  0xd6   : > { %vm492_vm13 = vcmp.eq.s32.totalorder %v2690_v55, %v2834_v22  ;;  %vm491_vm9 = vcmp.eq.s32.totalorder %v2685_v52, %v2834_v22  ;;  %2071 = vmatpush3.bf16.msra.mxu1 %v2244_v18  ;;  %vm2857_vm0 = vmor %vm368_vm7, %vm496_vm5  ;;  %vm486_vm5 = vcmp.eq.s32.totalorder %v2696_v57, %v2742_v6  ;;  %v3767_v18 = vmov 0 }
  0xd7   : > { %vm556_vm14 = vmor %vm364_vm3, %vm492_vm13  ;;  %2072 = vmatprep.subr.bf16.mxu1 %v2245_v19  ;;  %vm481_vm13 = vcmp.eq.s32.totalorder %v2700_v59, %v2739_v4  ;;  %v3769_v19 = vmov 0 }
  0xd8   : > { %vm1936_vm2 = vmpackc.low %vm556_vm14, %vm2826_vm4  ;;  %v268_v38 = vpop.permute.xlu0 %267 }
  0xd9   : > { %1937 = vmatprep.mubr.msk.bf16.mxu1 %vm1936_vm2, %v2474_v5  ;;  %vm555_vm3 = vmor %vm363_vm1, %vm491_vm9  ;;  %vm353_vm9 = vcmp.eq.s32.totalorder %v2700_v59, %v2712_v61  ;;  %vm357_vm2 = vcmp.eq.s32.totalorder %v2700_v59, %v2687_v53 }
  0xda   : > { %vm1938_vm7 = vmpackc.low %vm555_vm3, %vm2850_vm15  ;;  %v2875_v28 = vpop.permute.xlu1 %309  ;;  %2073 = vmatpush3.bf16.msra.mxu1 %v2246_v25  ;;  %vm358_vm15 = vcmp.eq.s32.totalorder %v2696_v57, %v2687_v53 }
  0xdb   : > { %1939 = vmatmul.mubr.msk.bf16.gmra.mrb[8].mxu1 %vm1938_vm7, %v2474_v5  ;;  %vm2881_vm4 = vmor %vm367_vm6, %vm495_vm12  ;;  %2074 = vmatprep.subr.bf16.mxu1 %v2247_v27  ;;  %vm485_vm12 = vcmp.eq.s32.totalorder %v2700_v59, %v2742_v6  ;;  %v3777_v27 = vmov 0 }
  0xdc   : > { %vm2894_vm1 = vmor %vm358_vm15, %vm486_vm5  ;;  %vm372_vm5 = vcmp.eq.s32.totalorder %v2690_v55, %v2875_v28 }
  0xdd   : > { %v3729_v32 = vsel %vm2894_vm1, 4294967295, %v3728_v32  ;;  %vm2909_vm6 = vmor %vm353_vm9, %vm481_vm13  ;;  %v399_v41 = vpop.permute.xlu0 %398 }
  0xde   : > { %2075 = vmatpush3.bf16.msra.mxu1 %v2248_v29  ;;  %v3731_v34 = vsel %vm2909_vm6, 4294967295, %v3730_v34  ;;  %vm2918_vm3 = vmor %vm357_vm2, %vm485_vm12  ;;  %vm371_vm2 = vcmp.eq.s32.totalorder %v2685_v52, %v2875_v28  ;;  %v2271_v29 = vld [vmem:[#allocation2 + $0x60] ss:$8 sps:$4 sm:$0xff]  }
  0xdf   : > { %v2913_v35 = vpop.permute.xlu1 %437  ;;  %2076 = vmatprep.subr.bf16.mxu1 %v2249_v31  ;;  %v3733_v37 = vsel %vm2918_vm3, 4294967295, %v3732_v37  ;;  %v2274_v31 = vld [vmem:[#allocation2 + $0x70] ss:$8 sps:$4 sm:$0xff]  }
  0xe0   : > { %vm500_vm7 = vcmp.eq.s32.totalorder %v2690_v55, %v2913_v35  ;;  %vm499_vm15 = vcmp.eq.s32.totalorder %v2685_v52, %v2913_v35 }
  0xe1   : > { %vm564_vm13 = vmor %vm372_vm5, %vm500_vm7  ;;  %vm366_vm5 = vcmp.eq.s32.totalorder %v2696_v57, %v2791_v15  ;;  %vm494_vm7 = vcmp.eq.s32.totalorder %v2696_v57, %v2834_v22 }
  0xe2   : > { %vm1940_vm12 = vmpackc.low %vm564_vm13, %vm2857_vm0  ;;  %2077 = vmatpush3.bf16.msra.mxu1 %v2250_v33  ;;  %vm490_vm0 = vcmp.eq.s32.totalorder %v2696_v57, %v2798_v16  ;;  %v271_v46 = vpop.permute.xlu0 %270 }
  0xe3   : > { %1941 = vmatprep.mubr.msk.bf16.mxu1 %vm1940_vm12, %v2474_v5  ;;  %vm563_vm14 = vmor %vm371_vm2, %vm499_vm15  ;;  %2078 = vmatprep.subr.bf16.mxu1 %v2251_v36  ;;  %vm362_vm15 = vcmp.eq.s32.totalorder %v2696_v57, %v2771_v11  ;;  %vm322_vm8 = vcmp.eq.s32.totalorder %v2696_v57, %v271_v46 }
  0xe4   : > { %vm1942_vm9 = vmpackc.low %vm563_vm14, %vm2881_vm4  ;;  %v265_v40 = vpop.permute.xlu1 %264 }
  0xe5   : > { %1943 = vmatmul.mubr.msk.bf16.gmra.mrb[12].mxu1 %vm1942_vm9, %v2474_v5  ;;  %vm2951_vm13 = vmor %vm362_vm15, %vm490_vm0  ;;  %vm313_vm4 = vcmp.eq.s32.totalorder %v2700_v59, %v265_v40  ;;  %vm312_vm0 = vcmp.eq.s32.totalorder %v2690_v55, %v265_v40  ;;  %vm314_vm10 = vcmp.eq.s32.totalorder %v2696_v57, %v265_v40  ;;  %vm311_vm1 = vcmp.eq.s32.totalorder %v2685_v52, %v265_v40 }
  0xe6   : > { %2079 = vmatpush3.bf16.msra.mxu1 %v2252_v39  ;;  %v3735_v43 = vsel %vm2951_vm13, 4294967295, %v3734_v43  ;;  %vm2959_vm2 = vmor %vm366_vm5, %vm494_vm7  ;;  %vm320_vm5 = vcmp.eq.s32.totalorder %v2690_v55, %v271_v46  ;;  %vm448_vm7 = vcmp.eq.s32.totalorder %v2690_v55, %v399_v41  ;;  %v3030_v60 = vpop.permute.xlu0 %279 }
  0xe7   : > { %v3737_v44 = vsel %vm2959_vm2, 4294967295, %v3736_v44  ;;  %vm450_vm2 = vcmp.eq.s32.totalorder %v2696_v57, %v399_v41 }
  0xe9   : > { %v393_v42 = vpop.permute.xlu1 %392 }
  0xea   : > { %vm441_vm14 = vcmp.eq.s32.totalorder %v2700_v59, %v393_v42  ;;  %vm440_vm9 = vcmp.eq.s32.totalorder %v2690_v55, %v393_v42  ;;  %vm442_vm12 = vcmp.eq.s32.totalorder %v2696_v57, %v393_v42  ;;  %vm439_vm15 = vcmp.eq.s32.totalorder %v2685_v52, %v393_v42  ;;  %v283_v4 = vpop.permute.xlu0 %282 }
  0xeb   : > { %vm2963_vm6 = vmor %vm313_vm4, %vm441_vm14  ;;  %vm317_vm4 = vcmp.eq.s32.totalorder %v2700_v59, %v268_v38 }
  0xec   : > { %vm2969_vm3 = vmor %vm312_vm0, %vm440_vm9 }
  0xed   : > { %v396_v48 = vpop.permute.xlu1 %395  ;;  %vm2977_vm14 = vmor %vm314_vm10, %vm442_vm12  ;;  %vm316_vm12 = vcmp.eq.s32.totalorder %v2690_v55, %v268_v38 }
  0xee   : > { %v3743_v49 = vsel %vm2977_vm14, 4294967295, %v3742_v49  ;;  %vm445_vm9 = vcmp.eq.s32.totalorder %v2700_v59, %v396_v48  ;;  %vm444_vm0 = vcmp.eq.s32.totalorder %v2690_v55, %v396_v48  ;;  %vm2984_vm11 = vmor %vm311_vm1, %vm439_vm15  ;;  %vm446_vm15 = vcmp.eq.s32.totalorder %v2696_v57, %v396_v48 }
  0xef   : > { %v3745_v50 = vsel %vm2984_vm11, 4294967295, %v3744_v50  ;;  %vm2990_vm13 = vmor %vm317_vm4, %vm445_vm9  ;;  %vm443_vm4 = vcmp.eq.s32.totalorder %v2685_v52, %v396_v48  ;;  %vm3752_vm1 = vnez %v3743_v49  ;;  %v411_v7 = vpop.permute.xlu0 %410 }
  0xf0   : > { %vm2994_vm10 = vmor %vm320_vm5, %vm448_vm7  ;;  %vm318_vm7 = vcmp.eq.s32.totalorder %v2696_v57, %v268_v38 }
  0xf1   : > { %v3749_v54 = vsel %vm2994_vm10, 4294967295, %v3748_v54  ;;  %vm508_vm11 = vmor %vm316_vm12, %vm444_vm0  ;;  %vm315_vm0 = vcmp.eq.s32.totalorder %v2685_v52, %v268_v38  ;;  %vm449_vm12 = vcmp.eq.s32.totalorder %v2700_v59, %v399_v41 }
  0xf2   : > { %vm3004_vm14 = vmor %vm322_vm8, %vm450_vm2  ;;  %v274_v58 = vpop.permute.xlu1 %273  ;;  %vm319_vm8 = vcmp.eq.s32.totalorder %v2685_v52, %v271_v46  ;;  %vm447_vm2 = vcmp.eq.s32.totalorder %v2685_v52, %v399_v41 }
  0xf3   : > { %v3751_v56 = vsel %vm3004_vm14, 4294967295, %v3750_v56  ;;  %vm1912_vm5 = vmpackc.low %vm508_vm11, %vm2969_vm3  ;;  %vm321_vm3 = vcmp.eq.s32.totalorder %v2700_v59, %v271_v46  ;;  %vm3753_vm14 = vnez %v3745_v50 }
  0xf4   : > { %1913 = vmatprep.mubr.msk.bf16.mxu0 %vm1912_vm5, %v2474_v5  ;;  %vm510_vm9 = vmor %vm318_vm7, %vm446_vm15  ;;  %vm324_vm15 = vcmp.eq.s32.totalorder %v2690_v55, %v274_v58 }
  0xf5   : > { %vm1944_vm10 = vmpackc.low %vm510_vm9, %vm3752_vm1 }
  0xf6   : > { %1945 = vmatprep.mubr.msk.bf16.mxu1 %vm1944_vm10, %v2474_v5  ;;  %vm507_vm11 = vmor %vm315_vm0, %vm443_vm4  ;;  %vm326_vm0 = vcmp.eq.s32.totalorder %v2696_v57, %v274_v58 }
  0xf7   : > { %vm1914_vm5 = vmpackc.low %vm507_vm11, %vm3753_vm14  ;;  %v402_v61 = vpop.permute.xlu1 %401  ;;  %vm3760_vm11 = vnez %v3751_v56 }
  0xf8   : > { %vm3754_vm1 = vmpackc.low %vm2990_vm13, %vm2963_vm6  ;;  %1915 = vmatmul.mubr.msk.bf16.vlgmr.msra.gmra.mrb[0].mxu0 %vm1914_vm5, %v2474_v5  ;;  %vm452_vm14 = vcmp.eq.s32.totalorder %v2690_v55, %v402_v61  ;;  %vm454_vm7 = vcmp.eq.s32.totalorder %v2696_v57, %v402_v61  ;;  %vm3759_vm13 = vnez %v3749_v54 }
  0xf9   : > { %1947 = vmatmul.mubr.msk.bf16.vlgmr.msra.gmra.mrb[16].mxu1 %vm3754_vm1, %v2474_v5  ;;  %vm3032_vm10 = vmor %vm319_vm8, %vm447_vm2  ;;  %vm451_vm8 = vcmp.eq.s32.totalorder %v2685_v52, %v402_v61  ;;  %vm323_vm1 = vcmp.eq.s32.totalorder %v2685_v52, %v274_v58 }
  0xfa   : > { %vm3039_vm4 = vmor %vm321_vm3, %vm449_vm12  ;;  %vm453_vm3 = vcmp.eq.s32.totalorder %v2700_v59, %v402_v61 }
  0xfb   : > { %vm516_vm6 = vmor %vm324_vm15, %vm452_vm14  ;;  %vm325_vm14 = vcmp.eq.s32.totalorder %v2700_v59, %v274_v58  ;;  %v3258_v58 = vld [vmem:[%s3682_s2] ss:$0 sm:$0xff] }
  0xfc   : > { %vm1916_vm9 = vmpackc.low %vm516_vm6, %vm3759_vm13  ;;  %v277_v3 = vpop.permute.xlu1 %276 }
  0xfd   : > { %1917 = vmatprep.mubr.msk.bf16.mxu0 %vm1916_vm9, %v2474_v5  ;;  %vm518_vm2 = vmor %vm326_vm0, %vm454_vm7  ;;  %vm328_vm13 = vcmp.eq.s32.totalorder %v2690_v55, %v277_v3 }
  0xfe   : > { %vm1948_vm5 = vmpackc.low %vm518_vm2, %vm3760_vm11  ;;  %vm330_vm2 = vcmp.eq.s32.totalorder %v2696_v57, %v277_v3 }
  0xff   : > { %1949 = vmatprep.mubr.msk.bf16.mxu1 %vm1948_vm5, %v2474_v5  ;;  %vm515_vm12 = vmor %vm323_vm1, %vm451_vm8  ;;  %vm327_vm5 = vcmp.eq.s32.totalorder %v2685_v52, %v277_v3  ;;  %vm332_vm1 = vcmp.eq.s32.totalorder %v2690_v55, %v3030_v60 }
 0x100   : > { %vm1918_vm15 = vmpackc.low %vm515_vm12, %vm3032_vm10  ;;  %vm329_vm12 = vcmp.eq.s32.totalorder %v2700_v59, %v277_v3 }
 0x101   : > { %1919 = vmatmul.mubr.msk.bf16.gmra.mrb[4].mxu0 %vm1918_vm15, %v2474_v5  ;;  %vm517_vm7 = vmor %vm325_vm14, %vm453_vm3  ;;  %v405_v6 = vpop.permute.xlu1 %404 }
 0x102   : > { %vm1950_vm6 = vmpackc.low %vm517_vm7, %vm3039_vm4  ;;  %vm456_vm9 = vcmp.eq.s32.totalorder %v2690_v55, %v405_v6  ;;  %vm458_vm0 = vcmp.eq.s32.totalorder %v2696_v57, %v405_v6  ;;  %vm455_vm8 = vcmp.eq.s32.totalorder %v2685_v52, %v405_v6  ;;  %vm457_vm4 = vcmp.eq.s32.totalorder %v2700_v59, %v405_v6 }
 0x103   : > { %1951 = vmatmul.mubr.msk.bf16.gmra.mrb[20].mxu1 %vm1950_vm6, %v2474_v5  ;;  %vm3064_vm10 = vmor %vm328_vm13, %vm456_vm9  ;;  %vm336_vm6 = vcmp.eq.s32.totalorder %v2690_v55, %v283_v4  ;;  %vm464_vm13 = vcmp.eq.s32.totalorder %v2690_v55, %v411_v7 }
 0x104   : > { %vm3070_vm11 = vmor %vm330_vm2, %vm458_vm0 }
 0x105   : > { %v408_v12 = vpop.permute.xlu1 %407  ;;  %vm3077_vm3 = vmor %vm327_vm5, %vm455_vm8  ;;  %vm334_vm8 = vcmp.eq.s32.totalorder %v2696_v57, %v3030_v60  ;;  %vm338_vm5 = vcmp.eq.s32.totalorder %v2696_v57, %v283_v4 }
 0x106   : > { %v3766_v13 = vsel %vm3077_vm3, 4294967295, %v3765_v13  ;;  %vm460_vm15 = vcmp.eq.s32.totalorder %v2690_v55, %v408_v12  ;;  %vm462_vm14 = vcmp.eq.s32.totalorder %v2696_v57, %v408_v12  ;;  %vm3084_vm7 = vmor %vm329_vm12, %vm457_vm4  ;;  %vm459_vm2 = vcmp.eq.s32.totalorder %v2685_v52, %v408_v12 }
 0x107   : > { %v3768_v18 = vsel %vm3084_vm7, 4294967295, %v3767_v18  ;;  %vm524_vm9 = vmor %vm332_vm1, %vm460_vm15  ;;  %vm466_vm4 = vcmp.eq.s32.totalorder %v2696_v57, %v411_v7  ;;  %vm461_vm15 = vcmp.eq.s32.totalorder %v2700_v59, %v408_v12  ;;  %vm463_vm3 = vcmp.eq.s32.totalorder %v2685_v52, %v411_v7 }
 0x108   : > { %vm1920_vm0 = vmpackc.low %vm524_vm9, %vm3064_vm10  ;;  %vm331_vm10 = vcmp.eq.s32.totalorder %v2685_v52, %v3030_v60  ;;  %vm335_vm9 = vcmp.eq.s32.totalorder %v2685_v52, %v283_v4 }
 0x109   : > { %1921 = vmatprep.mubr.msk.bf16.mxu0 %vm1920_vm0, %v2474_v5  ;;  %vm526_vm12 = vmor %vm334_vm8, %vm462_vm14  ;;  %vm333_vm0 = vcmp.eq.s32.totalorder %v2700_v59, %v3030_v60  ;;  %vm337_vm8 = vcmp.eq.s32.totalorder %v2700_v59, %v283_v4 }
 0x10a   : > { %vm3098_vm7 = vmor %vm336_vm6, %vm464_vm13  ;;  %v286_v20 = vpop.permute.xlu1 %285  ;;  %vm3773_vm13 = vnez %v3766_v13 }
 0x10b   : > { %v3770_v19 = vsel %vm3098_vm7, 4294967295, %v3769_v19  ;;  %vm1952_vm1 = vmpackc.low %vm526_vm12, %vm3070_vm11  ;;  %vm465_vm12 = vcmp.eq.s32.totalorder %v2700_v59, %v411_v7 }
 0x10c   : > { %1953 = vmatprep.mubr.msk.bf16.mxu1 %vm1952_vm1, %v2474_v5  ;;  %vm523_vm14 = vmor %vm331_vm10, %vm459_vm2  ;;  %vm489_vm2 = vcmp.eq.s32.totalorder %v2700_v59, %v2798_v16 }
 0x10d   : > { %vm3110_vm6 = vmor %vm338_vm5, %vm466_vm4  ;;  %vm3776_vm5 = vnez %v3768_v18 }
 0x10e   : > { %vm1922_vm11 = vmpackc.low %vm523_vm14, %vm3773_vm13  ;;  %vm340_vm13 = vcmp.eq.s32.totalorder %v2690_v55, %v286_v20 }
 0x10f   : > { %1923 = vmatmul.mubr.msk.bf16.gmra.mrb[8].mxu0 %vm1922_vm11, %v2474_v5  ;;  %vm525_vm7 = vmor %vm333_vm0, %vm461_vm15  ;;  %v414_v26 = vpop.permute.xlu1 %413 }
 0x110   : > { %vm3121_vm1 = vmor %vm335_vm9, %vm463_vm3  ;;  %vm361_vm9 = vcmp.eq.s32.totalorder %v2700_v59, %v2771_v11  ;;  %vm468_vm11 = vcmp.eq.s32.totalorder %v2690_v55, %v414_v26  ;;  %vm467_vm15 = vcmp.eq.s32.totalorder %v2685_v52, %v414_v26  ;;  %v2259_v11 = vld [vmem:[#allocation2 + $0x20] ss:$8 sps:$4 sm:$0xff]  }
 0x111   : > { %vm1954_vm4 = vmpackc.low %vm525_vm7, %vm3776_vm5  ;;  %vm470_vm7 = vcmp.eq.s32.totalorder %v2696_v57, %v414_v26 }
 0x112   : > { %1955 = vmatmul.mubr.msk.bf16.gmra.mrb[24].mxu1 %vm1954_vm4, %v2474_v5  ;;  %vm3130_vm10 = vmor %vm337_vm8, %vm465_vm12  ;;  %vm3783_vm12 = vnez %v3770_v19  ;;  %vm342_vm4 = vcmp.eq.s32.totalorder %v2696_v57, %v286_v20 }
 0x113   : > { %v3778_v27 = vsel %vm3130_vm10, 4294967295, %v3777_v27  ;;  %vm3143_vm0 = vmor %vm361_vm9, %vm489_vm2  ;;  %vm339_vm10 = vcmp.eq.s32.totalorder %v2685_v52, %v286_v20  ;;  %vm469_vm2 = vcmp.eq.s32.totalorder %v2700_v59, %v414_v26 }
 0x114   : > { %vm532_vm8 = vmor %vm340_vm13, %vm468_vm11  ;;  %vm341_vm11 = vcmp.eq.s32.totalorder %v2700_v59, %v286_v20 }
 0x115   : > { %vm1924_vm5 = vmpackc.low %vm532_vm8, %vm3783_vm12  ;;  %vm365_vm8 = vcmp.eq.s32.totalorder %v2700_v59, %v2791_v15  ;;  %v2264_v15 = vld [vmem:[#allocation2 + $0x34] ss:$8 sps:$4 sm:$0xff]  }
 0x116   : > { %1925 = vmatprep.mubr.msk.bf16.mxu0 %vm1924_vm5, %v2474_v5  ;;  %vm534_vm14 = vmor %vm342_vm4, %vm470_vm7  ;;  %vm493_vm7 = vcmp.eq.s32.totalorder %v2700_v59, %v2834_v22  ;;  %vm3787_vm5 = vnez %v3715_v14  ;;  %vm3788_vm4 = vnez %v3711_v1  ;;  %v2255_v1 = vld [vmem:[#allocation2 + $0x4] ss:$8 sps:$4 sm:$0xff]   ;;  %v2265_v22 = vld [vmem:[#allocation2 + $0x40] ss:$8 sps:$4 sm:$0xff]  }
 0x117   : > { %vm1956_vm3 = vmpackc.low %vm534_vm14, %vm3110_vm6  ;;  %vm3784_vm14 = vnez %v3778_v27  ;;  %1316 = vmatprep.subr.bf16.mxu0 %v2255_v1  ;;  %v2261_v14 = vld [vmem:[#allocation2 + $0x24] ss:$8 sps:$4 sm:$0xff]  }
 0x118   : > { %1957 = vmatprep.mubr.msk.bf16.mxu1 %vm1956_vm3, %v2474_v5  ;;  %vm531_vm9 = vmor %vm339_vm10, %vm467_vm15  ;;  %vm370_vm10 = vcmp.eq.s32.totalorder %v2696_v57, %v2830_v21  ;;  %vm502_vm15 = vcmp.eq.s32.totalorder %v2696_v57, %v2913_v35 }
 0x119   : > { %vm1926_vm13 = vmpackc.low %vm531_vm9, %vm3121_vm1  ;;  %vm498_vm1 = vcmp.eq.s32.totalorder %v2696_v57, %v2765_v9 }
 0x11a   : > { %1927 = vmatmul.mubr.msk.bf16.gmra.mrb[12].mxu0 %vm1926_vm13, %v2474_v5  ;;  %vm533_vm6 = vmor %vm341_vm11, %vm469_vm2  ;;  %vm374_vm13 = vcmp.eq.s32.totalorder %v2696_v57, %v2875_v28 }
 0x11b   : > { %vm1958_vm12 = vmpackc.low %vm533_vm6, %vm3784_vm14  ;;  %1348 = vmatprep.mubr.bf16.mxu0 %v2472_v0  ;;  %vm501_vm14 = vcmp.eq.s32.totalorder %v2700_v59, %v2913_v35 }
 0x11c   : > { %1959 = vmatmul.mubr.msk.bf16.gmra.mrb[28].mxu1 %vm1958_vm12, %v2474_v5  ;;  %vm3173_vm3 = vmor %vm365_vm8, %vm493_vm7  ;;  %vm369_vm8 = vcmp.eq.s32.totalorder %v2700_v59, %v2830_v21  ;;  %vm497_vm7 = vcmp.eq.s32.totalorder %v2700_v59, %v2765_v9  ;;  %v2258_v9 = vld [vmem:[#allocation2 + $0x14] ss:$8 sps:$4 sm:$0xff]   ;;  %v2267_v21 = vld [vmem:[#allocation2 + $0x44] ss:$8 sps:$4 sm:$0xff]  }
 0x11d   : > { %vm3789_vm2 = vmpackc.low %vm3787_vm5, %vm3788_vm4  ;;  %vm373_vm5 = vcmp.eq.s32.totalorder %v2700_v59, %v2875_v28  ;;  %v2253_v59 = vld [vmem:[#allocation2] ss:$8 sps:$4 sm:$0xff]   ;;  %v2270_v28 = vld [vmem:[#allocation2 + $0x54] ss:$8 sps:$4 sm:$0xff]  }
 0x11e   : > { %1961 = vmatprep.mubr.msk.bf16.mxu1 %vm3789_vm2, %v2474_v5  ;;  %vm1970_vm9 = vmpackc.low %vm3173_vm3, %vm3143_vm0  ;;  %vm3795_vm2 = vnez %v3713_v2  ;;  %1317 = vmatpush1.bf16.msra.mxu0 %v2253_v59  ;;  %v2256_v2 = vld [vmem:[#allocation2 + $0x10] ss:$8 sps:$4 sm:$0xff]  }
 0x11f   : > { %vm3191_vm11 = vmor %vm370_vm10, %vm498_vm1  ;;  %1318 = vmatprep.subr.bf16.mxu0 %v2258_v9 }
 0x120   : > { %vm566_vm6 = vmor %vm374_vm13, %vm502_vm15  ;;  %vm3794_vm15 = vnez %v3717_v17  ;;  %v2262_v17 = vld [vmem:[#allocation2 + $0x30] ss:$8 sps:$4 sm:$0xff]  }
 0x121   : > { %vm1972_vm12 = vmpackc.low %vm566_vm6, %vm3191_vm11  ;;  %vm3797_vm11 = vnez %v3729_v32  ;;  %vm3798_vm6 = vnez %v3721_v23  ;;  %v2268_v23 = vld [vmem:[#allocation2 + $0x50] ss:$8 sps:$4 sm:$0xff]  }
 0x122   : > { %vm3205_vm10 = vmor %vm369_vm8, %vm497_vm7  ;;  %vm3800_vm7 = vnez %v3733_v37  ;;  %1319 = vmatpush1.bf16.msra.mxu0 %v2256_v2 }
 0x123   : > { %vm565_vm1 = vmor %vm373_vm5, %vm501_vm14  ;;  %vm3801_vm14 = vnez %v3731_v34  ;;  %1320 = vmatprep.subr.bf16.mxu0 %v2261_v14 }
 0x124   : > { %vm1974_vm4 = vmpackc.low %vm565_vm1, %vm3205_vm10  ;;  %vm3803_vm10 = vnez %v3737_v44  ;;  %vm3804_vm1 = vnez %v3735_v43 }
 0x125   : > { %vm3796_vm13 = vmpackc.low %vm3794_vm15, %vm3795_vm2 }
 0x126   : > { %1963 = vmatmul.mubr.msk.bf16.gmra.mrb[32].mxu1 %vm3796_vm13, %v2474_v5  ;;  %vm3799_vm8 = vmpackc.low %vm3797_vm11, %vm3798_vm6  ;;  %1321 = vmatpush1.bf16.msra.mxu0 %v2259_v11 }
 0x127   : > { %1965 = vmatprep.mubr.msk.bf16.mxu1 %vm3799_vm8, %v2474_v5  ;;  %vm3802_vm5 = vmpackc.low %vm3800_vm7, %vm3801_vm14  ;;  %1322 = vmatprep.subr.bf16.mxu0 %v2264_v15 }
 0x128   : > { %vm3805_vm15 = vmpackc.low %vm3803_vm10, %vm3804_vm1 }
 0x12a   : > { %1323 = vmatpush1.bf16.msra.mxu0 %v2262_v17 }
 0x12b   : > { %1324 = vmatprep.subr.bf16.mxu0 %v2267_v21 }
 0x12e   : > { %1967 = vmatmul.mubr.msk.bf16.gmra.mrb[36].mxu1 %vm3802_vm5, %v2474_v5  ;;  %1325 = vmatpush1.bf16.msra.mxu0 %v2265_v22 }
 0x12f   : > { %1969 = vmatprep.mubr.msk.bf16.mxu1 %vm3805_vm15, %v2474_v5  ;;  %1326 = vmatprep.subr.bf16.mxu0 %v2270_v28 }
 0x132   : > { %1327 = vmatpush1.bf16.msra.mxu0 %v2268_v23 }
 0x136   : > { %1971 = vmatmul.mubr.msk.bf16.gmra.mrb[40].mxu1 %vm1970_vm9, %v2474_v5 }
 0x137   : > { %1973 = vmatprep.mubr.msk.bf16.mxu1 %vm1972_vm12, %v2474_v5 }
 0x13e   : > { %1975 = vmatmul.mubr.msk.bf16.gmra.mrb[44].mxu1 %vm1974_vm4, %v2474_v5  ;;  %v2273_v5 = vld [vmem:[#allocation2 + $0x64] ss:$8 sps:$4 sm:$0xff]  }
 0x13f   : > { %1328 = vmatprep.subr.bf16.mxu0 %v2273_v5 }
 0x140   : > { %1329 = vmatpush1.bf16.msra.mxu0 %v2271_v29 }
 0x141   : > { %1330 = vmatprep.subr.bf16.mxu0 %v2276_v30 }
 0x144   : > { %1331 = vmatpush1.bf16.msra.mxu0 %v2274_v31 }
 0x19c   : > { %v2040_v32 = vpop.f32.mrb[0].mxu1 }
 0x19d   : > { %v2041_v33 = vpop.f32.mrb[1].mxu1 }
 0x19e   : > { %v3243_v34 = vadd.f32 %v2041_v33, %v2040_v32  ;;  %v2043_v35 = vpop.f32.mrb[2].mxu1 }
 0x19f   : > { %v2044_v36 = vpop.f32.mrb[3].mxu1 }
 0x1a0   : > { %v3245_v37 = vadd.f32 %v2044_v36, %v2043_v35 }
 0x1a4   : > { %v2046_v38 = vpop.f32.mrb[4].mxu1 }
 0x1a5   : > { %v2047_v39 = vpop.f32.mrb[5].mxu1 }
 0x1a6   : > { %v3247_v40 = vadd.f32 %v2047_v39, %v2046_v38  ;;  %v2049_v41 = vpop.f32.mrb[6].mxu1 }
 0x1a7   : > { %v2050_v42 = vpop.f32.mrb[7].mxu1 }
 0x1a8   : > { %v3249_v43 = vadd.f32 %v2050_v42, %v2049_v41 }
 0x1ae   : > { %v2052_v44 = vpop.f32.mrb[8].mxu1 }
 0x1af   : > { %v2053_v45 = vpop.f32.mrb[9].mxu1 }
 0x1b0   : > { %v3251_v46 = vadd.f32 %v2053_v45, %v2052_v44  ;;  %v2055_v47 = vpop.f32.mrb[10].mxu1 }
 0x1b1   : > { %v2056_v48 = vpop.f32.mrb[11].mxu1 }
 0x1b2   : > { %v3253_v49 = vadd.f32 %v2056_v48, %v2055_v47 }
 0x1b8   : > { %v2058_v50 = vpop.f32.mrb[12].mxu1 }
 0x1b9   : > { %v2059_v53 = vpop.f32.mrb[13].mxu1 }
 0x1ba   : > { %v2060_v54 = vadd.f32 %v2059_v53, %v2058_v50  ;;  %v2061_v56 = vpop.f32.mrb[14].mxu1 }
 0x1bb   : > { %v2062_v60 = vpop.f32.mrb[15].mxu1 }
 0x1bc   : > { %v3261_v61 = vadd.f32 %v2060_v54, %v3258_v58  ;;  %v2063_v62 = vadd.f32 %v2062_v60, %v2061_v56 }
 0x1be   : > { %v3264_v63 = vadd.f32 %v2063_v62, %v3258_v58 }
 0x1cb   : > { %v2016_v4 = vpop.f32.mrb[0].mxu0 }
 0x1cc   : > { %v2080_v3 = vpop.f32.mrb[16].mxu1  ;;  %v2017_v7 = vpop.f32.mrb[1].mxu0 }
 0x1cd   : > { %v2081_v6 = vpop.f32.mrb[17].mxu1  ;;  %v2018_v12 = vadd.f32 %v2017_v7, %v2016_v4  ;;  %v2019_v13 = vpop.f32.mrb[2].mxu0 }
 0x1ce   : > { %v2082_v8 = vadd.f32 %v2081_v6, %v2080_v3  ;;  %v2083_v10 = vpop.f32.mrb[18].mxu1  ;;  %v2020_v19 = vpop.f32.mrb[3].mxu0 }
 0x1cf   : > { %v2084_v18 = vpop.f32.mrb[19].mxu1  ;;  %v1025_v24 = vadd.f32 %v2018_v12, %v3258_v58  ;;  %v2021_v25 = vadd.f32 %v2020_v19, %v2019_v13 }
 0x1d0   : > { %v2085_v20 = vadd.f32 %v2084_v18, %v2083_v10 }
 0x1d1   : > { %v1122_v26 = vadd.f32 %v2082_v8, %v1025_v24  ;;  %v1028_v27 = vadd.f32 %v2021_v25, %v3258_v58 }
 0x1d3   : > { %v1125_v16 = vadd.f32 %v2085_v20, %v1028_v27  ;;  %v1184_v57 = vmax.f32 %v1122_v26, 0.0 }
 0x1d4   : > { %v2022_v52 = vpop.f32.mrb[4].mxu0 }
 0x1d5   : > { %v2023_v55 = vpop.f32.mrb[5].mxu0  ;;  %v1185_v59 = vmax.f32 %v1125_v16, 0.0 }
 0x1d6   : > { %v2086_v1 = vpop.f32.mrb[20].mxu1  ;;  %v2024_v2 = vadd.f32 %v2023_v55, %v2022_v52  ;;  %v2025_v9 = vpop.f32.mrb[6].mxu0 }
 0x1d7   : > { %v2087_v11 = vpop.f32.mrb[21].mxu1  ;;  %v2026_v14 = vpop.f32.mrb[7].mxu0  ;;  %v1200_v15 = vpack.c.bf16 %v1185_v59, %v1184_v57 }
 0x1d8   : > { %v1033_v17 = vadd.f32 %v2024_v2, %v3258_v58  ;;  %v2088_v21 = vadd.f32 %v2087_v11, %v2086_v1  ;;  %v2089_v22 = vpop.f32.mrb[22].mxu1  ;;  %v2027_v23 = vadd.f32 %v2026_v14, %v2025_v9  ;;  %v1057_v14 = vadd.f32 %v3243_v34, %v3258_v58 }
 0x1d9   : > { %v2090_v28 = vpop.f32.mrb[23].mxu1  ;;  %1349 = vmatmul.mubr.bf16.vlgmr.msra.gmra.mrb[16].mxu0 %v1200_v15  ;;  %v1065_v34 = vadd.f32 %v3247_v40, %v3258_v58  ;;  %v1073_v40 = vadd.f32 %v3251_v46, %v3258_v58 }
 0x1da   : > { %v1130_v29 = vadd.f32 %v2088_v21, %v1033_v17  ;;  %v1036_v5 = vadd.f32 %v2027_v23, %v3258_v58  ;;  %v2091_v30 = vadd.f32 %v2090_v28, %v2089_v22  ;;  %1358 = vmatprep.mubr.bf16.mxu0 %v2472_v0  ;;  %v1060_v23 = vadd.f32 %v3245_v37, %v3258_v58 }
 0x1db   : > { %v1068_v37 = vadd.f32 %v3249_v43, %v3258_v58  ;;  %v1076_v43 = vadd.f32 %v3253_v49, %v3258_v58 }
 0x1dc   : > { %v1133_v31 = vadd.f32 %v2091_v30, %v1036_v5  ;;  %v1186_v32 = vmax.f32 %v1130_v29, 0.0 }
 0x1de   : > { %v1187_v33 = vmax.f32 %v1133_v31, 0.0 }
 0x1e0   : > { %v1201_v35 = vpack.c.bf16 %v1187_v33, %v1186_v32 }
 0x1e2   : > { %v2028_v36 = vpop.f32.mrb[8].mxu0  ;;  %1359 = vmatmul.mubr.bf16.gmra.mrb[20].mxu0 %v1201_v35 }
 0x1e3   : > { %v2029_v38 = vpop.f32.mrb[9].mxu0  ;;  %1368 = vmatprep.mubr.bf16.mxu0 %v2472_v0 }
 0x1e4   : > { %v2030_v41 = vadd.f32 %v2029_v38, %v2028_v36  ;;  %v2031_v42 = vpop.f32.mrb[10].mxu0 }
 0x1e5   : > { %v2092_v39 = vpop.f32.mrb[24].mxu1  ;;  %v2032_v45 = vpop.f32.mrb[11].mxu0 }
 0x1e6   : > { %v2093_v44 = vpop.f32.mrb[25].mxu1  ;;  %v1041_v47 = vadd.f32 %v2030_v41, %v3258_v58  ;;  %v2033_v53 = vadd.f32 %v2032_v45, %v2031_v42 }
 0x1e7   : > { %v2094_v48 = vadd.f32 %v2093_v44, %v2092_v39  ;;  %v2095_v50 = vpop.f32.mrb[26].mxu1 }
 0x1e8   : > { %v2096_v54 = vpop.f32.mrb[27].mxu1  ;;  %v1044_v60 = vadd.f32 %v2033_v53, %v3258_v58 }
 0x1e9   : > { %v1138_v56 = vadd.f32 %v2094_v48, %v1041_v47  ;;  %v2097_v62 = vadd.f32 %v2096_v54, %v2095_v50 }
 0x1eb   : > { %v1141_v3 = vadd.f32 %v2097_v62, %v1044_v60  ;;  %v1188_v4 = vmax.f32 %v1138_v56, 0.0 }
 0x1ed   : > { %v1189_v6 = vmax.f32 %v1141_v3, 0.0  ;;  %v2034_v7 = vpop.f32.mrb[12].mxu0 }
 0x1ee   : > { %v2035_v8 = vpop.f32.mrb[13].mxu0 }
 0x1ef   : > { %v2098_v10 = vpop.f32.mrb[28].mxu1  ;;  %v2036_v12 = vadd.f32 %v2035_v8, %v2034_v7  ;;  %v2037_v13 = vpop.f32.mrb[14].mxu0  ;;  %v1202_v18 = vpack.c.bf16 %v1189_v6, %v1188_v4 }
 0x1f0   : > { %v2099_v19 = vpop.f32.mrb[29].mxu1  ;;  %v2038_v20 = vpop.f32.mrb[15].mxu0 }
 0x1f1   : > { %v1049_v24 = vadd.f32 %v2036_v12, %v3258_v58  ;;  %v2100_v25 = vadd.f32 %v2099_v19, %v2098_v10  ;;  %v2101_v26 = vpop.f32.mrb[30].mxu1  ;;  %v2039_v27 = vadd.f32 %v2038_v20, %v2037_v13  ;;  %1369 = vmatmul.mubr.bf16.gmra.mrb[24].mxu0 %v1202_v18 }
 0x1f2   : > { %v2102_v16 = vpop.f32.mrb[31].mxu1  ;;  %1378 = vmatprep.mubr.bf16.mxu0 %v2472_v0 }
 0x1f3   : > { %v1146_v52 = vadd.f32 %v2100_v25, %v1049_v24  ;;  %v1052_v55 = vadd.f32 %v2039_v27, %v3258_v58  ;;  %v2103_v57 = vadd.f32 %v2102_v16, %v2101_v26  ;;  %v1227_v26 = vshrl.u32 %v258_v51, 7  ;;  %v1224_v16 = vld [vmem:[%s3684_s4] sm:$0x3] }
 0x1f5   : > { %v1149_v59 = vadd.f32 %v2103_v57, %v1052_v55  ;;  %v1190_v1 = vmax.f32 %v1146_v52, 0.0  ;;  %v1228_v27 = vsub.s32 0, %v1227_v26  ;;  %v1232_v52 = vsub.s32 1, %v1227_v26 }
 0x1f7   : > { %v1191_v2 = vmax.f32 %v1149_v59, 0.0  ;;  %v3299_v55 = vrot.slane %v1224_v16, %v1228_v27 }
 0x1f9   : > { %v2104_v9 = vpop.f32.mrb[32].mxu1  ;;  %v1203_v21 = vpack.c.bf16 %v1191_v2, %v1190_v1 }
 0x1fa   : > { %v2105_v11 = vpop.f32.mrb[33].mxu1 }
 0x1fb   : > { %v2106_v15 = vadd.f32 %v2105_v11, %v2104_v9  ;;  %v2107_v17 = vpop.f32.mrb[34].mxu1  ;;  %1379 = vmatmul.mubr.bf16.gmra.mrb[28].mxu0 %v1203_v21 }
 0x1fc   : > { %v2108_v22 = vpop.f32.mrb[35].mxu1  ;;  %1388 = vmatprep.mubr.bf16.mxu0 %v2472_v0 }
 0x1fd   : > { %v1154_v28 = vadd.f32 %v2106_v15, %v1057_v14  ;;  %v2109_v29 = vadd.f32 %v2108_v22, %v2107_v17 }
 0x1ff   : > { %v1157_v5 = vadd.f32 %v2109_v29, %v1060_v23  ;;  %v1192_v30 = vmax.f32 %v1154_v28, 0.0 }
 0x201   : > { %v1193_v31 = vmax.f32 %v1157_v5, 0.0  ;;  %v2110_v32 = vpop.f32.mrb[36].mxu1 }
 0x202   : > { %v2111_v33 = vpop.f32.mrb[37].mxu1 }
 0x203   : > { %v2112_v35 = vadd.f32 %v2111_v33, %v2110_v32  ;;  %v2113_v36 = vpop.f32.mrb[38].mxu1  ;;  %v1204_v38 = vpack.c.bf16 %v1193_v31, %v1192_v30 }
 0x204   : > { %v2114_v39 = vpop.f32.mrb[39].mxu1 }
 0x205   : > { %v1162_v41 = vadd.f32 %v2112_v35, %v1065_v34  ;;  %v2115_v42 = vadd.f32 %v2114_v39, %v2113_v36  ;;  %1389 = vmatmul.mubr.bf16.gmra.mrb[32].mxu0 %v1204_v38 }
 0x206   : > { %1398 = vmatprep.mubr.bf16.mxu0 %v2472_v0 }
 0x207   : > { %v1165_v44 = vadd.f32 %v2115_v42, %v1068_v37  ;;  %v1194_v45 = vmax.f32 %v1162_v41, 0.0 }
 0x209   : > { %v1195_v47 = vmax.f32 %v1165_v44, 0.0  ;;  %v2116_v48 = vpop.f32.mrb[40].mxu1 }
 0x20a   : > { %v2117_v50 = vpop.f32.mrb[41].mxu1 }
 0x20b   : > { %v2118_v53 = vadd.f32 %v2117_v50, %v2116_v48  ;;  %v2119_v54 = vpop.f32.mrb[42].mxu1  ;;  %v1205_v56 = vpack.c.bf16 %v1195_v47, %v1194_v45 }
 0x20c   : > { %v2120_v60 = vpop.f32.mrb[43].mxu1 }
 0x20d   : > { %v1170_v62 = vadd.f32 %v2118_v53, %v1073_v40  ;;  %v2121_v3 = vadd.f32 %v2120_v60, %v2119_v54  ;;  %1399 = vmatmul.mubr.bf16.gmra.mrb[36].mxu0 %v1205_v56 }
 0x20e   : > { %1408 = vmatprep.mubr.bf16.mxu0 %v2472_v0 }
 0x20f   : > { %v1173_v4 = vadd.f32 %v2121_v3, %v1076_v43  ;;  %v1196_v6 = vmax.f32 %v1170_v62, 0.0 }
 0x211   : > { %v1197_v7 = vmax.f32 %v1173_v4, 0.0  ;;  %v2122_v8 = vpop.f32.mrb[44].mxu1 }
 0x212   : > { %v2123_v10 = vpop.f32.mrb[45].mxu1 }
 0x213   : > { %v2124_v12 = vadd.f32 %v2123_v10, %v2122_v8  ;;  %v2125_v13 = vpop.f32.mrb[46].mxu1  ;;  %v1206_v46 = vpack.c.bf16 %v1197_v7, %v1196_v6 }
 0x214   : > { %v2126_v18 = vpop.f32.mrb[47].mxu1 }
 0x215   : > { %v1178_v19 = vadd.f32 %v2124_v12, %v3261_v61  ;;  %v2127_v20 = vadd.f32 %v2126_v18, %v2125_v13  ;;  %1409 = vmatmul.mubr.bf16.gmra.mrb[40].mxu0 %v1206_v46  ;;  %v3301_v61 = vrot.slane %v1224_v16, %v1232_v52 }
 0x216   : > { %1418 = vmatprep.mubr.bf16.mxu0 %v2472_v0 }
 0x217   : > { %v1181_v49 = vadd.f32 %v2127_v20, %v3264_v63  ;;  %v1198_v58 = vmax.f32 %v1178_v19, 0.0 }
 0x219   : > { %v1199_v24 = vmax.f32 %v1181_v49, 0.0 }
 0x21b   : > { %v1207_v25 = vpack.c.bf16 %v1199_v24, %v1198_v58 }
 0x21d   : > { %1419 = vmatmul.mubr.bf16.gmra.mrb[44].mxu0 %v1207_v25 }
 0x2ac   : > { %v1350_v57 = vpop.f32.mrb[16].mxu0 }
 0x2ad   : > { %v3304_v0 = vadd.f32 %v1350_v57, %v3299_v55  ;;  %v1352_v63 = vpop.f32.mrb[17].mxu0 }
 0x2ae   : > { %v3307_v59 = vadd.f32 %v1352_v63, %v3301_v61  ;;  %v1354_v1 = vpop.f32.mrb[18].mxu0 }
 0x2af   : > { %v3310_v51 = vadd.f32 %v1354_v1, %v3299_v55  ;;  %v1356_v2 = vpop.f32.mrb[19].mxu0 }
 0x2b0   : > { %v3313_v9 = vadd.f32 %v1356_v2, %v3301_v61  ;;  %v1429_v11 = vmax.f32 %v3304_v0, %v3307_v59 }
 0x2b2   : > { %1430 = vmax.xlane.f32.xlu1 %v1429_v11  ;;  %v1432_v14 = vmax.f32 %v3310_v51, %v3313_v9 }
 0x2b4   : > { %1433 = vmax.xlane.f32.xlu0 %v1432_v14 }
 0x2b5   : > { %v1360_v15 = vpop.f32.mrb[20].mxu0 }
 0x2b6   : > { %v3320_v17 = vadd.f32 %v1360_v15, %v3299_v55  ;;  %v1362_v21 = vpop.f32.mrb[21].mxu0 }
 0x2b7   : > { %v3323_v22 = vadd.f32 %v1362_v21, %v3301_v61  ;;  %v1364_v23 = vpop.f32.mrb[22].mxu0 }
 0x2b8   : > { %v3326_v28 = vadd.f32 %v1364_v23, %v3299_v55  ;;  %v1366_v29 = vpop.f32.mrb[23].mxu0 }
 0x2b9   : > { %v3329_v5 = vadd.f32 %v1366_v29, %v3301_v61  ;;  %v1435_v30 = vmax.f32 %v3320_v17, %v3323_v22 }
 0x2bb   : > { %1436 = vmax.xlane.f32.xlu0 %v1435_v30  ;;  %v1438_v31 = vmax.f32 %v3326_v28, %v3329_v5 }
 0x2bd   : > { %1439 = vmax.xlane.f32.xlu1 %v1438_v31 }
 0x2c4   : > { %v1370_v32 = vpop.f32.mrb[24].mxu0 }
 0x2c5   : > { %v3336_v33 = vadd.f32 %v1370_v32, %v3299_v55  ;;  %v1372_v34 = vpop.f32.mrb[25].mxu0 }
 0x2c6   : > { %v3339_v35 = vadd.f32 %v1372_v34, %v3301_v61  ;;  %v1374_v36 = vpop.f32.mrb[26].mxu0 }
 0x2c7   : > { %v3342_v38 = vadd.f32 %v1374_v36, %v3299_v55  ;;  %v1376_v39 = vpop.f32.mrb[27].mxu0 }
 0x2c8   : > { %v3345_v37 = vadd.f32 %v1376_v39, %v3301_v61  ;;  %v1441_v41 = vmax.f32 %v3336_v33, %v3339_v35 }
 0x2ca   : > { %1442 = vmax.xlane.f32.xlu0 %v1441_v41  ;;  %v1444_v42 = vmax.f32 %v3342_v38, %v3345_v37 }
 0x2cc   : > { %1445 = vmax.xlane.f32.xlu1 %v1444_v42 }
 0x2ce   : > { %v1380_v44 = vpop.f32.mrb[28].mxu0 }
 0x2cf   : > { %v3352_v45 = vadd.f32 %v1380_v44, %v3299_v55  ;;  %v1382_v47 = vpop.f32.mrb[29].mxu0 }
 0x2d0   : > { %v3355_v48 = vadd.f32 %v1382_v47, %v3301_v61  ;;  %v1384_v50 = vpop.f32.mrb[30].mxu0 }
 0x2d1   : > { %v3358_v40 = vadd.f32 %v1384_v50, %v3299_v55  ;;  %v1386_v53 = vpop.f32.mrb[31].mxu0 }
 0x2d2   : > { %v3361_v54 = vadd.f32 %v1386_v53, %v3301_v61  ;;  %v1447_v56 = vmax.f32 %v3352_v45, %v3355_v48 }
 0x2d4   : > { %1448 = vmax.xlane.f32.xlu0 %v1447_v56  ;;  %v1450_v60 = vmax.f32 %v3358_v40, %v3361_v54 }
 0x2d6   : > { %1451 = vmax.xlane.f32.xlu1 %v1450_v60 }
 0x2d8   : > { %v1390_v43 = vpop.f32.mrb[32].mxu0 }
 0x2d9   : > { %v3368_v62 = vadd.f32 %v1390_v43, %v3299_v55  ;;  %v1392_v3 = vpop.f32.mrb[33].mxu0 }
 0x2da   : > { %v3371_v4 = vadd.f32 %v1392_v3, %v3301_v61  ;;  %v1394_v6 = vpop.f32.mrb[34].mxu0 }
 0x2db   : > { %v3374_v7 = vadd.f32 %v1394_v6, %v3299_v55  ;;  %v1396_v8 = vpop.f32.mrb[35].mxu0 }
 0x2dc   : > { %v3377_v10 = vadd.f32 %v1396_v8, %v3301_v61  ;;  %v1453_v12 = vmax.f32 %v3368_v62, %v3371_v4 }
 0x2de   : > { %1454 = vmax.xlane.f32.xlu0 %v1453_v12  ;;  %v1456_v13 = vmax.f32 %v3374_v7, %v3377_v10 }
 0x2e0   : > { %v1400_v46 = vpop.f32.mrb[36].mxu0  ;;  %1457 = vmax.xlane.f32.xlu1 %v1456_v13 }
 0x2e1   : > { %v3384_v18 = vadd.f32 %v1400_v46, %v3299_v55  ;;  %v1402_v19 = vpop.f32.mrb[37].mxu0 }
 0x2e2   : > { %v3387_v20 = vadd.f32 %v1402_v19, %v3301_v61  ;;  %v1404_v49 = vpop.f32.mrb[38].mxu0 }
 0x2e3   : > { %v3390_v58 = vadd.f32 %v1404_v49, %v3299_v55  ;;  %v1406_v24 = vpop.f32.mrb[39].mxu0 }
 0x2e4   : > { %v3393_v25 = vadd.f32 %v1406_v24, %v3301_v61  ;;  %v1459_v26 = vmax.f32 %v3384_v18, %v3387_v20 }
 0x2e6   : > { %1460 = vmax.xlane.f32.xlu0 %v1459_v26  ;;  %v1462_v27 = vmax.f32 %v3390_v58, %v3393_v25 }
 0x2e8   : > { %v1410_v16 = vpop.f32.mrb[40].mxu0  ;;  %1463 = vmax.xlane.f32.xlu1 %v1462_v27 }
 0x2e9   : > { %v3400_v52 = vadd.f32 %v1410_v16, %v3299_v55  ;;  %v1412_v57 = vpop.f32.mrb[41].mxu0 }
 0x2ea   : > { %v3403_v63 = vadd.f32 %v1412_v57, %v3301_v61  ;;  %v1414_v1 = vpop.f32.mrb[42].mxu0 }
 0x2eb   : > { %v3406_v2 = vadd.f32 %v1414_v1, %v3299_v55  ;;  %v1416_v11 = vpop.f32.mrb[43].mxu0 }
 0x2ec   : > { %v3409_v14 = vadd.f32 %v1416_v11, %v3301_v61  ;;  %v1465_v15 = vmax.f32 %v3400_v52, %v3403_v63 }
 0x2ee   : > { %1466 = vmax.xlane.f32.xlu0 %v1465_v15  ;;  %v1468_v21 = vmax.f32 %v3406_v2, %v3409_v14 }
 0x2f0   : > { %v1420_v23 = vpop.f32.mrb[44].mxu0  ;;  %1469 = vmax.xlane.f32.xlu1 %v1468_v21 }
 0x2f1   : > { %v3416_v29 = vadd.f32 %v1420_v23, %v3299_v55  ;;  %v1422_v30 = vpop.f32.mrb[45].mxu0 }
 0x2f2   : > { %v3419_v31 = vadd.f32 %v1422_v30, %v3301_v61  ;;  %v1424_v32 = vpop.f32.mrb[46].mxu0 }
 0x2f3   : > { %v3422_v34 = vadd.f32 %v1424_v32, %v3299_v55  ;;  %v1426_v36 = vpop.f32.mrb[47].mxu0 }
 0x2f4   : > { %v3425_v39 = vadd.f32 %v1426_v36, %v3301_v61  ;;  %v1471_v41 = vmax.f32 %v3416_v29, %v3419_v31 }
 0x2f6   : > { %1472 = vmax.xlane.f32.xlu0 %v1471_v41  ;;  %v1474_v42 = vmax.f32 %v3422_v34, %v3425_v39 }
 0x2f8   : > { %1475 = vmax.xlane.f32.xlu1 %v1474_v42 }
 0x33f   : > { %v1431_v44 = vpop.xlane.xlu1 %1430 }
 0x340   : > { %v3432_v47 = vsub.f32 %v3304_v0, %v1431_v44  ;;  %v3435_v50 = vsub.f32 %v3307_v59, %v1431_v44 }
 0x341   : > { %v1434_v55 = vpop.xlane.xlu0 %1433 }
 0x342   : > { %v1509_v53 = vmul.f32 1.442695, %v3432_v47  ;;  %v1511_v61 = vmul.f32 1.442695, %v3435_v50  ;;  %v3440_v56 = vsub.f32 %v3310_v51, %v1434_v55  ;;  %v3443_v60 = vsub.f32 %v3313_v9, %v1434_v55 }
 0x344   : > { %2277 = vpow2.f32 %v1509_v53  ;;  %v1513_v43 = vmul.f32 1.442695, %v3440_v56  ;;  %v1515_v0 = vmul.f32 1.442695, %v3443_v60 }
 0x345   : > { %2279 = vpow2.f32 %v1511_v61 }
 0x346   : > { %2281 = vpow2.f32 %v1513_v43 }
 0x347   : > { %2283 = vpow2.f32 %v1515_v0 }
 0x348   : > { %v1437_v59 = vpop.xlane.xlu0 %1436 }
 0x349   : > { %v3448_v3 = vsub.f32 %v3320_v17, %v1437_v59  ;;  %v3451_v6 = vsub.f32 %v3323_v22, %v1437_v59 }
 0x34a   : > { %v1440_v51 = vpop.xlane.xlu1 %1439 }
 0x34b   : > { %v1517_v8 = vmul.f32 1.442695, %v3448_v3  ;;  %v1519_v9 = vmul.f32 1.442695, %v3451_v6  ;;  %v3456_v12 = vsub.f32 %v3326_v28, %v1440_v51  ;;  %v3459_v13 = vsub.f32 %v3329_v5, %v1440_v51 }
 0x34d   : > { %2285 = vpow2.f32 %v1517_v8  ;;  %v1521_v46 = vmul.f32 1.442695, %v3456_v12  ;;  %v1523_v17 = vmul.f32 1.442695, %v3459_v13 }
 0x34e   : > { %2287 = vpow2.f32 %v1519_v9  ;;  %v2278_v19 = vpop.eup %2277 }
 0x34f   : > { %2289 = vpow2.f32 %v1521_v46  ;;  %v2280_v22 = vpop.eup %2279 }
 0x350   : > { %2291 = vpow2.f32 %v1523_v17  ;;  %v2282_v49 = vpop.eup %2281  ;;  %v1573_v24 = vadd.f32 %v2280_v22, %v2278_v19 }
 0x351   : > { %v2284_v26 = vpop.eup %2283 }
 0x352   : > { %1574 = vadd.xlane.f32.xlu0 %v1573_v24  ;;  %v1576_v27 = vadd.f32 %v2284_v26, %v2282_v49 }
 0x354   : > { %1577 = vadd.xlane.f32.xlu1 %v1576_v27 }
 0x357   : > { %v1443_v28 = vpop.xlane.xlu0 %1442  ;;  %v2286_v16 = vpop.eup %2285 }
 0x358   : > { %v3464_v5 = vsub.f32 %v3336_v33, %v1443_v28  ;;  %v3467_v57 = vsub.f32 %v3339_v35, %v1443_v28  ;;  %v2288_v1 = vpop.eup %2287 }
 0x359   : > { %v1446_v11 = vpop.xlane.xlu1 %1445  ;;  %v2290_v15 = vpop.eup %2289  ;;  %v1579_v41 = vadd.f32 %v2288_v1, %v2286_v16 }
 0x35a   : > { %v1525_v21 = vmul.f32 1.442695, %v3464_v5  ;;  %v1527_v23 = vmul.f32 1.442695, %v3467_v57  ;;  %v3472_v30 = vsub.f32 %v3342_v38, %v1446_v11  ;;  %v3475_v32 = vsub.f32 %v3345_v37, %v1446_v11  ;;  %v2292_v36 = vpop.eup %2291 }
 0x35b   : > { %v1582_v42 = vadd.f32 %v2292_v36, %v2290_v15  ;;  %1580 = vadd.xlane.f32.xlu0 %v1579_v41 }
 0x35c   : > { %2293 = vpow2.f32 %v1525_v21  ;;  %v1529_v33 = vmul.f32 1.442695, %v3472_v30  ;;  %v1531_v35 = vmul.f32 1.442695, %v3475_v32 }
 0x35d   : > { %2295 = vpow2.f32 %v1527_v23  ;;  %1583 = vadd.xlane.f32.xlu1 %v1582_v42 }
 0x35e   : > { %2297 = vpow2.f32 %v1529_v33 }
 0x35f   : > { %2299 = vpow2.f32 %v1531_v35 }
 0x361   : > { %v1449_v44 = vpop.xlane.xlu0 %1448 }
 0x362   : > { %v3480_v38 = vsub.f32 %v3352_v45, %v1449_v44  ;;  %v3483_v37 = vsub.f32 %v3355_v48, %v1449_v44 }
 0x363   : > { %v1452_v55 = vpop.xlane.xlu1 %1451 }
 0x364   : > { %v1533_v53 = vmul.f32 1.442695, %v3480_v38  ;;  %v1535_v61 = vmul.f32 1.442695, %v3483_v37  ;;  %v3488_v43 = vsub.f32 %v3358_v40, %v1452_v55  ;;  %v3491_v0 = vsub.f32 %v3361_v54, %v1452_v55 }
 0x366   : > { %v2294_v59 = vpop.eup %2293  ;;  %2301 = vpow2.f32 %v1533_v53  ;;  %v1537_v51 = vmul.f32 1.442695, %v3488_v43  ;;  %v1539_v45 = vmul.f32 1.442695, %v3491_v0 }
 0x367   : > { %v2296_v8 = vpop.eup %2295  ;;  %2303 = vpow2.f32 %v1535_v61 }
 0x368   : > { %v2298_v48 = vpop.eup %2297  ;;  %2305 = vpow2.f32 %v1537_v51  ;;  %v1585_v9 = vadd.f32 %v2296_v8, %v2294_v59 }
 0x369   : > { %v2300_v46 = vpop.eup %2299  ;;  %2307 = vpow2.f32 %v1539_v45 }
 0x36a   : > { %1586 = vadd.xlane.f32.xlu0 %v1585_v9  ;;  %v1588_v19 = vadd.f32 %v2300_v46, %v2298_v48 }
 0x36b   : > { %v1455_v17 = vpop.xlane.xlu0 %1454 }
 0x36c   : > { %v3496_v40 = vsub.f32 %v3368_v62, %v1455_v17  ;;  %v3499_v54 = vsub.f32 %v3371_v4, %v1455_v17  ;;  %1589 = vadd.xlane.f32.xlu1 %v1588_v19 }
 0x36d   : > { %v1458_v22 = vpop.xlane.xlu1 %1457 }
 0x36e   : > { %v1541_v49 = vmul.f32 1.442695, %v3496_v40  ;;  %v1543_v24 = vmul.f32 1.442695, %v3499_v54  ;;  %v3504_v26 = vsub.f32 %v3374_v7, %v1458_v22  ;;  %v3507_v27 = vsub.f32 %v3377_v10, %v1458_v22 }
 0x370   : > { %2309 = vpow2.f32 %v1541_v49  ;;  %v1545_v62 = vmul.f32 1.442695, %v3504_v26  ;;  %v1547_v28 = vmul.f32 1.442695, %v3507_v27  ;;  %v2302_v4 = vpop.eup %2301 }
 0x371   : > { %2311 = vpow2.f32 %v1543_v24  ;;  %v2304_v16 = vpop.eup %2303 }
 0x372   : > { %2313 = vpow2.f32 %v1545_v62  ;;  %v2306_v11 = vpop.eup %2305  ;;  %v1591_v10 = vadd.f32 %v2304_v16, %v2302_v4 }
 0x373   : > { %2315 = vpow2.f32 %v1547_v28  ;;  %v1461_v1 = vpop.xlane.xlu0 %1460  ;;  %v2308_v21 = vpop.eup %2307 }
 0x374   : > { %v3512_v15 = vsub.f32 %v3384_v18, %v1461_v1  ;;  %v3515_v7 = vsub.f32 %v3387_v20, %v1461_v1  ;;  %1592 = vadd.xlane.f32.xlu0 %v1591_v10  ;;  %v1594_v42 = vadd.f32 %v2308_v21, %v2306_v11 }
 0x375   : > { %v1464_v23 = vpop.xlane.xlu1 %1463 }
 0x376   : > { %v1549_v36 = vmul.f32 1.442695, %v3512_v15  ;;  %v1551_v41 = vmul.f32 1.442695, %v3515_v7  ;;  %v3520_v33 = vsub.f32 %v3390_v58, %v1464_v23  ;;  %v3523_v35 = vsub.f32 %v3393_v25, %v1464_v23  ;;  %1595 = vadd.xlane.f32.xlu1 %v1594_v42 }
 0x378   : > { %2317 = vpow2.f32 %v1549_v36  ;;  %v1553_v18 = vmul.f32 1.442695, %v3520_v33  ;;  %v1555_v20 = vmul.f32 1.442695, %v3523_v35 }
 0x379   : > { %2319 = vpow2.f32 %v1551_v41 }
 0x37a   : > { %v2310_v44 = vpop.eup %2309  ;;  %2321 = vpow2.f32 %v1553_v18 }
 0x37b   : > { %v2312_v55 = vpop.eup %2311  ;;  %2323 = vpow2.f32 %v1555_v20  ;;  %v1467_v53 = vpop.xlane.xlu0 %1466 }
 0x37c   : > { %v2314_v61 = vpop.eup %2313  ;;  %v3528_v58 = vsub.f32 %v3400_v52, %v1467_v53  ;;  %v3531_v25 = vsub.f32 %v3403_v63, %v1467_v53  ;;  %v1597_v59 = vadd.f32 %v2312_v55, %v2310_v44 }
 0x37d   : > { %v2316_v51 = vpop.eup %2315  ;;  %v1470_v45 = vpop.xlane.xlu1 %1469 }
 0x37e   : > { %v1557_v8 = vmul.f32 1.442695, %v3528_v58  ;;  %v1559_v48 = vmul.f32 1.442695, %v3531_v25  ;;  %v3536_v9 = vsub.f32 %v3406_v2, %v1470_v45  ;;  %v3539_v46 = vsub.f32 %v3409_v14, %v1470_v45  ;;  %1598 = vadd.xlane.f32.xlu0 %v1597_v59 }
 0x37f   : > { %v1600_v17 = vadd.f32 %v2316_v51, %v2314_v61 }
 0x380   : > { %2325 = vpow2.f32 %v1557_v8  ;;  %v1561_v52 = vmul.f32 1.442695, %v3536_v9  ;;  %v1563_v63 = vmul.f32 1.442695, %v3539_v46 }
 0x381   : > { %2327 = vpow2.f32 %v1559_v48  ;;  %1601 = vadd.xlane.f32.xlu1 %v1600_v17 }
 0x382   : > { %v2318_v19 = vpop.eup %2317  ;;  %2329 = vpow2.f32 %v1561_v52 }
 0x383   : > { %v2320_v22 = vpop.eup %2319  ;;  %2331 = vpow2.f32 %v1563_v63  ;;  %v1473_v49 = vpop.xlane.xlu0 %1472 }
 0x384   : > { %v2322_v24 = vpop.eup %2321  ;;  %v3544_v2 = vsub.f32 %v3416_v29, %v1473_v49  ;;  %v3547_v14 = vsub.f32 %v3419_v31, %v1473_v49  ;;  %v1603_v62 = vadd.f32 %v2320_v22, %v2318_v19 }
 0x385   : > { %v2324_v28 = vpop.eup %2323  ;;  %v1476_v4 = vpop.xlane.xlu1 %1475 }
 0x386   : > { %v1565_v16 = vmul.f32 1.442695, %v3544_v2  ;;  %v1567_v1 = vmul.f32 1.442695, %v3547_v14  ;;  %v3552_v11 = vsub.f32 %v3422_v34, %v1476_v4  ;;  %v3555_v10 = vsub.f32 %v3425_v39, %v1476_v4  ;;  %1604 = vadd.xlane.f32.xlu0 %v1603_v62 }
 0x387   : > { %v1606_v21 = vadd.f32 %v2324_v28, %v2322_v24 }
 0x388   : > { %2333 = vpow2.f32 %v1565_v16  ;;  %v1569_v29 = vmul.f32 1.442695, %v3552_v11  ;;  %v1571_v31 = vmul.f32 1.442695, %v3555_v10 }
 0x389   : > { %2335 = vpow2.f32 %v1567_v1  ;;  %1607 = vadd.xlane.f32.xlu1 %v1606_v21 }
 0x38a   : > { %v2326_v23 = vpop.eup %2325  ;;  %2337 = vpow2.f32 %v1569_v29 }
 0x38b   : > { %v2328_v36 = vpop.eup %2327  ;;  %2339 = vpow2.f32 %v1571_v31 }
 0x38c   : > { %v2330_v41 = vpop.eup %2329  ;;  %v1609_v42 = vadd.f32 %v2328_v36, %v2326_v23 }
 0x38d   : > { %v2332_v34 = vpop.eup %2331 }
 0x38e   : > { %1610 = vadd.xlane.f32.xlu0 %v1609_v42  ;;  %v1612_v39 = vadd.f32 %v2332_v34, %v2330_v41 }
 0x390   : > { %1613 = vadd.xlane.f32.xlu1 %v1612_v39 }
 0x392   : > { %v2334_v18 = vpop.eup %2333 }
 0x393   : > { %v2336_v20 = vpop.eup %2335 }
 0x394   : > { %v2338_v44 = vpop.eup %2337  ;;  %v1615_v55 = vadd.f32 %v2336_v20, %v2334_v18 }
 0x395   : > { %v2340_v53 = vpop.eup %2339 }
 0x396   : > { %1616 = vadd.xlane.f32.xlu0 %v1615_v55  ;;  %v1618_v61 = vadd.f32 %v2340_v53, %v2338_v44 }
 0x398   : > { %1619 = vadd.xlane.f32.xlu1 %v1618_v61 }
 0x3df   : > { %v1575_v59 = vpop.xlane.xlu0 %1574 }
 0x3e0   : > { %2341 = vlog2.f32 %v1575_v59 }
 0x3e1   : > { %v1578_v51 = vpop.xlane.xlu1 %1577 }
 0x3e2   : > { %2343 = vlog2.f32 %v1578_v51 }
 0x3e8   : > { %v1581_v45 = vpop.xlane.xlu0 %1580 }
 0x3e9   : > { %2345 = vlog2.f32 %v1581_v45 }
 0x3ea   : > { %v1584_v8 = vpop.xlane.xlu1 %1583  ;;  %v2342_v48 = vpop.eup %2341 }
 0x3eb   : > { %2347 = vlog2.f32 %v1584_v8  ;;  %v1622_v17 = vmul.f32 0.6931472, %v2342_v48 }
 0x3ec   : > { %v2344_v52 = vpop.eup %2343 }
 0x3ed   : > { %v1653_v63 = vsub.f32 %v3432_v47, %v1622_v17  ;;  %v1654_v19 = vsub.f32 %v3435_v50, %v1622_v17  ;;  %v1624_v22 = vmul.f32 0.6931472, %v2344_v52 }
 0x3ef   : > { %1685 = vst [vmem:[%s3564_s17] sm:$0xff] %v1653_v63  ;;  %1686 = vst [vmem:[%s3564_s17 + $0x8] sm:$0xff] %v1654_v19  ;;  %v1655_v49 = vsub.f32 %v3440_v56, %v1624_v22  ;;  %v1656_v24 = vsub.f32 %v3443_v60, %v1624_v22 }
 0x3f1   : > { %1687 = vst [vmem:[%s3564_s17 + $0x10] sm:$0xff] %v1655_v49  ;;  %1688 = vst [vmem:[%s3564_s17 + $0x18] sm:$0xff] %v1656_v24 }
 0x3f3   : > { %v2346_v47 = vpop.eup %2345 }
 0x3f4   : > { %v1626_v62 = vmul.f32 0.6931472, %v2346_v47 }
 0x3f5   : > { %v2348_v50 = vpop.eup %2347 }
 0x3f6   : > { %v1628_v28 = vmul.f32 0.6931472, %v2348_v50  ;;  %v1657_v16 = vsub.f32 %v3448_v3, %v1626_v62  ;;  %v1658_v1 = vsub.f32 %v3451_v6, %v1626_v62 }
 0x3f7   : > { %v1587_v4 = vpop.xlane.xlu0 %1586 }
 0x3f8   : > { %2349 = vlog2.f32 %v1587_v4  ;;  %v1659_v21 = vsub.f32 %v3456_v12, %v1628_v28  ;;  %v1660_v56 = vsub.f32 %v3459_v13, %v1628_v28  ;;  %1689 = vst [vmem:[%s3564_s17 + $0x20] sm:$0xff] %v1657_v16  ;;  %1690 = vst [vmem:[%s3564_s17 + $0x28] sm:$0xff] %v1658_v1 }
 0x3f9   : > { %v1590_v29 = vpop.xlane.xlu1 %1589 }
 0x3fa   : > { %2351 = vlog2.f32 %v1590_v29  ;;  %1691 = vst [vmem:[%s3564_s17 + $0x30] sm:$0xff] %v1659_v21  ;;  %1692 = vst [vmem:[%s3564_s17 + $0x38] sm:$0xff] %v1660_v56 }
 0x401   : > { %v1593_v60 = vpop.xlane.xlu0 %1592 }
 0x402   : > { %v2350_v31 = vpop.eup %2349  ;;  %2353 = vlog2.f32 %v1593_v60 }
 0x403   : > { %v1630_v3 = vmul.f32 0.6931472, %v2350_v31  ;;  %v1596_v23 = vpop.xlane.xlu1 %1595 }
 0x404   : > { %v2352_v6 = vpop.eup %2351  ;;  %2355 = vlog2.f32 %v1596_v23 }
 0x405   : > { %v1661_v12 = vsub.f32 %v3464_v5, %v1630_v3  ;;  %v1662_v13 = vsub.f32 %v3467_v57, %v1630_v3  ;;  %v1632_v36 = vmul.f32 0.6931472, %v2352_v6 }
 0x407   : > { %1693 = vst [vmem:[%s3564_s17 + $0x40] sm:$0xff] %v1661_v12  ;;  %1694 = vst [vmem:[%s3564_s17 + $0x48] sm:$0xff] %v1662_v13  ;;  %v1663_v41 = vsub.f32 %v3472_v30, %v1632_v36  ;;  %v1664_v42 = vsub.f32 %v3475_v32, %v1632_v36 }
 0x409   : > { %1695 = vst [vmem:[%s3564_s17 + $0x50] sm:$0xff] %v1663_v41  ;;  %1696 = vst [vmem:[%s3564_s17 + $0x58] sm:$0xff] %v1664_v42 }
 0x40b   : > { %v1599_v34 = vpop.xlane.xlu0 %1598 }
 0x40c   : > { %2357 = vlog2.f32 %v1599_v34  ;;  %v2354_v39 = vpop.eup %2353 }
 0x40d   : > { %v1634_v18 = vmul.f32 0.6931472, %v2354_v39 }
 0x40e   : > { %v1602_v5 = vpop.xlane.xlu1 %1601  ;;  %v2356_v57 = vpop.eup %2355 }
 0x40f   : > { %2359 = vlog2.f32 %v1602_v5  ;;  %v1665_v20 = vsub.f32 %v3480_v38, %v1634_v18  ;;  %v1666_v44 = vsub.f32 %v3483_v37, %v1634_v18  ;;  %v1636_v55 = vmul.f32 0.6931472, %v2356_v57 }
 0x411   : > { %1697 = vst [vmem:[%s3564_s17 + $0x60] sm:$0xff] %v1665_v20  ;;  %1698 = vst [vmem:[%s3564_s17 + $0x68] sm:$0xff] %v1666_v44  ;;  %v1667_v32 = vsub.f32 %v3488_v43, %v1636_v55  ;;  %v1668_v53 = vsub.f32 %v3491_v0, %v1636_v55 }
 0x413   : > { %v1605_v30 = vpop.xlane.xlu0 %1604  ;;  %1699 = vst [vmem:[%s3564_s17 + $0x70] sm:$0xff] %v1667_v32  ;;  %1700 = vst [vmem:[%s3564_s17 + $0x78] sm:$0xff] %v1668_v53 }
 0x414   : > { %2361 = vlog2.f32 %v1605_v30 }
 0x416   : > { %v2358_v61 = vpop.eup %2357  ;;  %v1608_v59 = vpop.xlane.xlu1 %1607 }
 0x417   : > { %v1638_v38 = vmul.f32 0.6931472, %v2358_v61  ;;  %2363 = vlog2.f32 %v1608_v59 }
 0x419   : > { %v2360_v37 = vpop.eup %2359  ;;  %v1669_v51 = vsub.f32 %v3496_v40, %v1638_v38  ;;  %v1670_v45 = vsub.f32 %v3499_v54, %v1638_v38 }
 0x41a   : > { %v1640_v8 = vmul.f32 0.6931472, %v2360_v37 }
 0x41b   : > { %1701 = vst [vmem:[%s3564_s17 + $0x80] sm:$0xff] %v1669_v51  ;;  %1702 = vst [vmem:[%s3564_s17 + $0x88] sm:$0xff] %v1670_v45  ;;  %v1611_v43 = vpop.xlane.xlu0 %1610 }
 0x41c   : > { %v1671_v0 = vsub.f32 %v3504_v26, %v1640_v8  ;;  %v1672_v48 = vsub.f32 %v3507_v27, %v1640_v8  ;;  %2365 = vlog2.f32 %v1611_v43 }
 0x41d   : > { %v1614_v17 = vpop.xlane.xlu1 %1613 }
 0x41e   : > { %v2362_v52 = vpop.eup %2361  ;;  %1703 = vst [vmem:[%s3564_s17 + $0x90] sm:$0xff] %v1671_v0  ;;  %1704 = vst [vmem:[%s3564_s17 + $0x98] sm:$0xff] %v1672_v48  ;;  %2367 = vlog2.f32 %v1614_v17 }
 0x41f   : > { %v1642_v40 = vmul.f32 0.6931472, %v2362_v52 }
 0x421   : > { %v2364_v54 = vpop.eup %2363  ;;  %v1673_v63 = vsub.f32 %v3512_v15, %v1642_v40  ;;  %v1674_v19 = vsub.f32 %v3515_v7, %v1642_v40 }
 0x422   : > { %v1644_v22 = vmul.f32 0.6931472, %v2364_v54 }
 0x423   : > { %1705 = vst [vmem:[%s3564_s17 + $0xa0] sm:$0xff] %v1673_v63  ;;  %1706 = vst [vmem:[%s3564_s17 + $0xa8] sm:$0xff] %v1674_v19  ;;  %v1617_v26 = vpop.xlane.xlu0 %1616 }
 0x424   : > { %v1675_v27 = vsub.f32 %v3520_v33, %v1644_v22  ;;  %v1676_v49 = vsub.f32 %v3523_v35, %v1644_v22  ;;  %2369 = vlog2.f32 %v1617_v26 }
 0x425   : > { %v1620_v24 = vpop.xlane.xlu1 %1619 }
 0x426   : > { %v2366_v47 = vpop.eup %2365  ;;  %1707 = vst [vmem:[%s3564_s17 + $0xb0] sm:$0xff] %v1675_v27  ;;  %1708 = vst [vmem:[%s3564_s17 + $0xb8] sm:$0xff] %v1676_v49  ;;  %2371 = vlog2.f32 %v1620_v24 }
 0x427   : > { %v1646_v15 = vmul.f32 0.6931472, %v2366_v47 }
 0x428   : > { %v2368_v7 = vpop.eup %2367 }
 0x429   : > { %v1677_v50 = vsub.f32 %v3528_v58, %v1646_v15  ;;  %v1678_v62 = vsub.f32 %v3531_v25, %v1646_v15  ;;  %v1648_v28 = vmul.f32 0.6931472, %v2368_v7 }
 0x42b   : > { %1709 = vst [vmem:[%s3564_s17 + $0xc0] sm:$0xff] %v1677_v50  ;;  %1710 = vst [vmem:[%s3564_s17 + $0xc8] sm:$0xff] %v1678_v62  ;;  %v1679_v33 = vsub.f32 %v3536_v9, %v1648_v28  ;;  %v1680_v35 = vsub.f32 %v3539_v46, %v1648_v28 }
 0x42d   : > { %1711 = vst [vmem:[%s3564_s17 + $0xd0] sm:$0xff] %v1679_v33  ;;  %1712 = vst [vmem:[%s3564_s17 + $0xd8] sm:$0xff] %v1680_v35 }
 0x42e   : > { %v2370_v4 = vpop.eup %2369 }
 0x42f   : > { %v1650_v16 = vmul.f32 0.6931472, %v2370_v4 }
 0x430   : > { %v2372_v58 = vpop.eup %2371 }
 0x431   : > { %v1681_v25 = vsub.f32 %v3544_v2, %v1650_v16  ;;  %v1682_v1 = vsub.f32 %v3547_v14, %v1650_v16  ;;  %v1652_v21 = vmul.f32 0.6931472, %v2372_v58 }
 0x433   : > { %1713 = vst [vmem:[%s3564_s17 + $0xe0] sm:$0xff] %v1681_v25  ;;  %1714 = vst [vmem:[%s3564_s17 + $0xe8] sm:$0xff] %v1682_v1  ;;  %v1683_v9 = vsub.f32 %v3552_v11, %v1652_v21  ;;  %v1684_v46 = vsub.f32 %v3555_v10, %v1652_v21 }
 0x435   : > { %1715 = vst [vmem:[%s3564_s17 + $0xf0] sm:$0xff] %v1683_v9  ;;  %1716 = vst [vmem:[%s3564_s17 + $0xf8] sm:$0xff] %v1684_v46 }
 0x436   : > { %2414 = shalt.err (!%p2411_p7)
}
 0x437   : > { %s2415_s12 = scalar_lea.hbm %s3627_s8, 4096  ;;  %s2419_s14 = scalar_lea.hbm %s3685_s5, 8192 }
 0x438   : > { %p2416_p8 = scmp.ne.s32.totalorder %s3627_s8, %s2415_s12  ;;  %p2420_p1 = scmp.lt.u32.totalorder %s3627_s8, %s3685_s5 }
 0x439   : > { %p2421_p0 = scmp.lt.u32.totalorder %s2419_s14, %s2415_s12  ;;  %p2423_p6 = scmp.lt.u32.totalorder %s2415_s12, %s3627_s8 }
 0x43a   : > { %p2417_p11 = pnand %p2416_p8, %p3806_p9 }
 0x43b   : > { %p2422_p5 = por %p2421_p0, %p2420_p1 }
 0x43c   : > { %p2418_p13 = pneg %p2417_p11 }
 0x43d   : > { %p2424_p10 = por %p2423_p6, %p2422_p5 }
 0x43f   : > { %p2425_p12 = pnand %p2424_p10, %p2418_p13 }
 0x441   : > { %2428 = shalt.err (!%p2425_p12)
}
 0x442   : > { %s2476_s17 = smov 256   ;;  %s2477_s23 = smov 16  }
 0x443   : > { %2148 = dma.vmem_to_hbm [thread:$0]  (%p3806_p9), %s3629_s25, 4096, %s3627_s8, %s3639_s22, %s2476_s17, %s2476_s17, %s2477_s23  }
 0x444 PF: > { %p2160_p2 = scmp.ge.s32.totalorder %s2467_s21, 2  ;;  %s1747_s26 = sand.u32 1, %s2455_s18  }
 0x445   : > { %p3807_p3 = scmp.ne.s32.totalorder %s3700_s29, 0  ;;  %s1748_s6 = scalar_lea.sflag [#allocation4], %s1747_s26 }
 0x447   : > { %p2155_p4 = pnand %p2160_p2, %p3807_p3 }
 0x449   : > { %2450 = dma.done.wait (!%p2155_p4), %s1748_s6, 4096  }
 0x44a   : > { %2452 = vsyncadd (!%p2155_p4), %s1748_s6, 4294963200  ;;  %p16_p7 = scmp.ge.s32.totalorder %s2533_s24, 4   ;;  %s3808_s18 = smov %s2459_s19 }
 0x44b   : > { %s3809_s19 = smov %s2463_s20  ;;  %s3810_s20 = smov %s2544_s27 }
 0x44c   : > { %s3811_s21 = smov %s2533_s24  ;;  %18 = sbr.rel (!%p16_p7) target bundleno = 4 (0x4), region = 80 }
 0x453   :  { %1753 = vsyncpa [#allocation3], 1 }
 0x454   :  { %1755 = vsyncpa [#allocation3 + $0x1], 1 }
 0x455   :  { %1756 = vsyncpa [#allocation4], 1 }
 0x456   :  { %1758 = vsyncpa [#allocation4 + $0x1], 1 }

</bundles_post_ra>
